<compile_context>
chip_gen: v5e
topology: v5e:2x2
jax: 0.10.0
libtpu: 0.0.40
codegen_flags: <defaults>
</compile_context>

<pallas_src>
import numpy as np
import jax
import jax.numpy as jnp
from jax.experimental import pallas as pl
from jax.experimental.pallas import tpu as pltpu


def _fused_convt_kernel(xr_ref, a_ref, e_ref, brow_ref, o_ref):
    """Fused ConvTranspose2d forward (stride >= kernel, batch 1).

    xr_ref:   (Cin*H, W)          f32  input in natural NCHW row order
    a_ref:    (KW, Rp, Cin*H)     bf16 weight + row-scatter + row-crop
    e_ref:    (KW, W, Xp)         bf16 0/1 column-scatter + column-crop
    brow_ref: (Rp, 1)             f32  bias per output row (co, y)
    o_ref:    (Co*H_out, W_out)   f32  final cropped output
    """
    kw_taps, rows_p, _ = a_ref.shape
    lanes_p = e_ref.shape[2]

    xr = xr_ref[...].astype(jnp.bfloat16)                      # (Cin*H, W)
    acc = jnp.zeros((rows_p, lanes_p), jnp.float32)
    for kw in range(kw_taps):                                  # static unroll (4)
        c = jnp.dot(a_ref[kw], xr,
                    preferred_element_type=jnp.float32)        # (Rp, W)
        acc = acc + jnp.dot(c.astype(jnp.bfloat16), e_ref[kw],
                            preferred_element_type=jnp.float32)  # (Rp, Xp)
    out = acc + brow_ref[...]                                  # bias everywhere
    o_ref[...] = out[: o_ref.shape[0], : o_ref.shape[1]]       # crop -> store


def init_conv_transpose(weight, bias, *, in_h, in_w, stride, padding):
    """One-time (init) precomputation of the constant kernel operands."""
    w_np = np.asarray(weight, np.float32)      # (Cin, Co, KH, KW) PyTorch layout
    b_np = np.asarray(bias, np.float32)        # (Co,)
    cin, co, kh_sz, kw_sz = w_np.shape
    assert stride >= kh_sz and stride >= kw_sz  # non-overlapping output patches

    h_out = (in_h - 1) * stride - 2 * padding + kh_sz
    w_out = (in_w - 1) * stride - 2 * padding + kw_sz

    rows = co * h_out                          # output rows (co, y)
    rows_p = ((rows + 7) // 8) * 8             # sublane-align the matmul M dim
    k1 = cin * in_h                            # contraction dim (cin, h)
    lanes_p = ((w_out + 63) // 64) * 64        # lane pad of the intermediate

    r = np.arange(rows)
    co_idx, y_idx = r // h_out, r % h_out
    c = np.arange(k1)
    cin_idx, h_idx = c // in_h, c % in_h

    a_mat = np.zeros((kw_sz, rows_p, k1), np.float32)
    e_mat = np.zeros((kw_sz, in_w, lanes_p), np.float32)
    for kw in range(kw_sz):
        # kh such that y = stride*h + kh - padding
        kh = y_idx[:, None] + padding - stride * h_idx[None, :]          # (rows, k1)
        valid = (kh >= 0) & (kh < kh_sz)
        vals = w_np[cin_idx[None, :], co_idx[:, None],
                    np.clip(kh, 0, kh_sz - 1), kw]
        a_mat[kw, :rows, :] = np.where(valid, vals, 0.0)
        for w in range(in_w):
            x_col = stride * w + kw - padding
            if 0 <= x_col < w_out:
                e_mat[kw, w, x_col] = 1.0

    brow = np.zeros((rows_p, 1), np.float32)
    brow[:rows, 0] = np.repeat(b_np, h_out)

    consts = (jnp.asarray(a_mat, jnp.bfloat16),
              jnp.asarray(e_mat, jnp.bfloat16),
              jnp.asarray(brow, jnp.float32))
    dims = dict(cin=cin, co=co, in_h=in_h, in_w=in_w, h_out=h_out, w_out=w_out)
    return consts, dims


def make_forward(dims):
    cin, co = dims["cin"], dims["co"]
    in_h, in_w = dims["in_h"], dims["in_w"]
    h_out, w_out = dims["h_out"], dims["w_out"]

    # Gridless single-tile call: whole problem resident in VMEM (<1 MB), no
    # grid / pipelining / dimension_semantics (would be pure overhead here).
    call = pl.pallas_call(
        _fused_convt_kernel,
        out_shape=jax.ShapeDtypeStruct((co * h_out, w_out), jnp.float32),
        in_specs=[pl.BlockSpec(memory_space=pltpu.MemorySpace.VMEM)] * 4,
        out_specs=pl.BlockSpec(memory_space=pltpu.MemorySpace.VMEM),
    )

    @jax.jit
    def forward(x, a_mat, e_mat, brow):
        # (1, Cin, H, W) -> (Cin*H, W): pure metadata reshape, no transpose.
        xr = x.reshape(cin * in_h, in_w)
        out = call(xr, a_mat, e_mat, brow)           # (Co*H_out, W_out)
        # Free (bitcast) reshape back to NCHW.
        return out.reshape(1, co, h_out, w_out)

    return forward


if __name__ == "__main__":
    key = jax.random.PRNGKey(0)
    kx, kw_key, kb_key = jax.random.split(key, 3)

    CIN, CO, KH, KW = 32, 5, 4, 4
    STRIDE, PADDING = 8, 1
    H = W = 7

    # Shapes implied by the module: x1 = randn(1, 32, 7, 7)
    x1 = jax.random.normal(kx, (1, CIN, H, W), dtype=jnp.float32)

    # Deterministic ConvTranspose2d(32, 5, 4) params (PyTorch-style uniform).
    bound = 1.0 / float(np.sqrt(CO * KH * KW))
    weight = jax.random.uniform(kw_key, (CIN, CO, KH, KW), jnp.float32, -bound, bound)
    bias = jax.random.uniform(kb_key, (CO,), jnp.float32, -bound, bound)

    consts, dims = init_conv_transpose(weight, bias, in_h=H, in_w=W,
                                       stride=STRIDE, padding=PADDING)
    forward = make_forward(dims)

    out = forward(x1, *consts)
    out = jax.block_until_ready(out)
    assert out.shape == (1, 5, 50, 50), out.shape
    assert out.dtype == jnp.float32

    # ---- pure-numpy reference (transposed conv, overwrite semantics) ----
    x_np = np.asarray(x1)[0]            # (Cin, H, W)
    w_np = np.asarray(weight)           # (Cin, Co, KH, KW)
    b_np = np.asarray(bias)             # (Co,)
    full = np.zeros((CO, (H - 1) * STRIDE + KH, (W - 1) * STRIDE + KW), np.float32)
    for h in range(H):
        for w in range(W):
            full[:, h * STRIDE:h * STRIDE + KH, w * STRIDE:w * STRIDE + KW] += \
                np.einsum("c,cokl->okl", x_np[:, h, w], w_np)
    full += b_np[:, None, None]
    ref = full[:, PADDING:PADDING + dims["h_out"], PADDING:PADDING + dims["w_out"]]
    err = float(np.abs(np.asarray(out)[0] - ref).max())
    assert np.allclose(np.asarray(out)[0], ref, atol=5e-2, rtol=5e-2), err

    print("KERNEL_OK")
</pallas_src>

<mosaic_0001>
module attributes {stable_mosaic.version = 11 : i64} {
  func.func @_fused_convt_kernel(%arg0: memref<224x7xf32, #tpu.memory_space<vmem>>, %arg1: memref<4x256x224xbf16, #tpu.memory_space<vmem>>, %arg2: memref<4x7x64xbf16, #tpu.memory_space<vmem>>, %arg3: memref<256x1xf32, #tpu.memory_space<vmem>>, %arg4: memref<250x50xf32, #tpu.memory_space<vmem>>) attributes {dimension_semantics = [], scalar_prefetch = 0 : i64, scratch_operands = 0 : i64, tpu.core_type = #tpu.core_type<tc>} {
    %c0 = arith.constant 0 : index
    %c0_0 = arith.constant 0 : index
    %0 = vector.load %arg0[%c0, %c0_0] : memref<224x7xf32, #tpu.memory_space<vmem>>, vector<224x7xf32>
    %1 = arith.truncf %0 : vector<224x7xf32> to vector<224x7xbf16>
    %cst = arith.constant 0.000000e+00 : f32
    %2 = vector.broadcast %cst : f32 to vector<256x64xf32>
    %c0_1 = arith.constant 0 : index
    %c0_2 = arith.constant 0 : index
    %c0_3 = arith.constant 0 : index
    %3 = vector.load %arg1[%c0_1, %c0_2, %c0_3] : memref<4x256x224xbf16, #tpu.memory_space<vmem>>, vector<1x256x224xbf16>
    %4 = vector.shape_cast %3 : vector<1x256x224xbf16> to vector<256x224xbf16>
    %cst_4 = arith.constant dense<0.000000e+00> : vector<256x7xf32>
    %5 = tpu.matmul %4, %1, %cst_4 {dimension_numbers = #tpu.dot_dimension_numbers<[1], [0], [0], [1], [0, 0, 1, 1], [], []>} : vector<256x224xbf16>, vector<224x7xbf16>, vector<256x7xf32> -> vector<256x7xf32>
    %6 = arith.truncf %5 : vector<256x7xf32> to vector<256x7xbf16>
    %c0_5 = arith.constant 0 : index
    %c0_6 = arith.constant 0 : index
    %c0_7 = arith.constant 0 : index
    %7 = vector.load %arg2[%c0_5, %c0_6, %c0_7] : memref<4x7x64xbf16, #tpu.memory_space<vmem>>, vector<1x7x64xbf16>
    %8 = vector.shape_cast %7 : vector<1x7x64xbf16> to vector<7x64xbf16>
    %cst_8 = arith.constant dense<0.000000e+00> : vector<256x64xf32>
    %9 = tpu.matmul %6, %8, %cst_8 {dimension_numbers = #tpu.dot_dimension_numbers<[1], [0], [0], [1], [0, 0, 1, 1], [], []>} : vector<256x7xbf16>, vector<7x64xbf16>, vector<256x64xf32> -> vector<256x64xf32>
    %10 = arith.addf %2, %9 : vector<256x64xf32>
    %c1 = arith.constant 1 : index
    %c0_9 = arith.constant 0 : index
    %c0_10 = arith.constant 0 : index
    %11 = vector.load %arg1[%c1, %c0_9, %c0_10] : memref<4x256x224xbf16, #tpu.memory_space<vmem>>, vector<1x256x224xbf16>
    %12 = vector.shape_cast %11 : vector<1x256x224xbf16> to vector<256x224xbf16>
    %cst_11 = arith.constant dense<0.000000e+00> : vector<256x7xf32>
    %13 = tpu.matmul %12, %1, %cst_11 {dimension_numbers = #tpu.dot_dimension_numbers<[1], [0], [0], [1], [0, 0, 1, 1], [], []>} : vector<256x224xbf16>, vector<224x7xbf16>, vector<256x7xf32> -> vector<256x7xf32>
    %14 = arith.truncf %13 : vector<256x7xf32> to vector<256x7xbf16>
    %c1_12 = arith.constant 1 : index
    %c0_13 = arith.constant 0 : index
    %c0_14 = arith.constant 0 : index
    %15 = vector.load %arg2[%c1_12, %c0_13, %c0_14] : memref<4x7x64xbf16, #tpu.memory_space<vmem>>, vector<1x7x64xbf16>
    %16 = vector.shape_cast %15 : vector<1x7x64xbf16> to vector<7x64xbf16>
    %cst_15 = arith.constant dense<0.000000e+00> : vector<256x64xf32>
    %17 = tpu.matmul %14, %16, %cst_15 {dimension_numbers = #tpu.dot_dimension_numbers<[1], [0], [0], [1], [0, 0, 1, 1], [], []>} : vector<256x7xbf16>, vector<7x64xbf16>, vector<256x64xf32> -> vector<256x64xf32>
    %18 = arith.addf %10, %17 : vector<256x64xf32>
    %c2 = arith.constant 2 : index
    %c0_16 = arith.constant 0 : index
    %c0_17 = arith.constant 0 : index
    %19 = vector.load %arg1[%c2, %c0_16, %c0_17] : memref<4x256x224xbf16, #tpu.memory_space<vmem>>, vector<1x256x224xbf16>
    %20 = vector.shape_cast %19 : vector<1x256x224xbf16> to vector<256x224xbf16>
    %cst_18 = arith.constant dense<0.000000e+00> : vector<256x7xf32>
    %21 = tpu.matmul %20, %1, %cst_18 {dimension_numbers = #tpu.dot_dimension_numbers<[1], [0], [0], [1], [0, 0, 1, 1], [], []>} : vector<256x224xbf16>, vector<224x7xbf16>, vector<256x7xf32> -> vector<256x7xf32>
    %22 = arith.truncf %21 : vector<256x7xf32> to vector<256x7xbf16>
    %c2_19 = arith.constant 2 : index
    %c0_20 = arith.constant 0 : index
    %c0_21 = arith.constant 0 : index
    %23 = vector.load %arg2[%c2_19, %c0_20, %c0_21] : memref<4x7x64xbf16, #tpu.memory_space<vmem>>, vector<1x7x64xbf16>
    %24 = vector.shape_cast %23 : vector<1x7x64xbf16> to vector<7x64xbf16>
    %cst_22 = arith.constant dense<0.000000e+00> : vector<256x64xf32>
    %25 = tpu.matmul %22, %24, %cst_22 {dimension_numbers = #tpu.dot_dimension_numbers<[1], [0], [0], [1], [0, 0, 1, 1], [], []>} : vector<256x7xbf16>, vector<7x64xbf16>, vector<256x64xf32> -> vector<256x64xf32>
    %26 = arith.addf %18, %25 : vector<256x64xf32>
    %c3 = arith.constant 3 : index
    %c0_23 = arith.constant 0 : index
    %c0_24 = arith.constant 0 : index
    %27 = vector.load %arg1[%c3, %c0_23, %c0_24] : memref<4x256x224xbf16, #tpu.memory_space<vmem>>, vector<1x256x224xbf16>
    %28 = vector.shape_cast %27 : vector<1x256x224xbf16> to vector<256x224xbf16>
    %cst_25 = arith.constant dense<0.000000e+00> : vector<256x7xf32>
    %29 = tpu.matmul %28, %1, %cst_25 {dimension_numbers = #tpu.dot_dimension_numbers<[1], [0], [0], [1], [0, 0, 1, 1], [], []>} : vector<256x224xbf16>, vector<224x7xbf16>, vector<256x7xf32> -> vector<256x7xf32>
    %30 = arith.truncf %29 : vector<256x7xf32> to vector<256x7xbf16>
    %c3_26 = arith.constant 3 : index
    %c0_27 = arith.constant 0 : index
    %c0_28 = arith.constant 0 : index
    %31 = vector.load %arg2[%c3_26, %c0_27, %c0_28] : memref<4x7x64xbf16, #tpu.memory_space<vmem>>, vector<1x7x64xbf16>
    %32 = vector.shape_cast %31 : vector<1x7x64xbf16> to vector<7x64xbf16>
    %cst_29 = arith.constant dense<0.000000e+00> : vector<256x64xf32>
    %33 = tpu.matmul %30, %32, %cst_29 {dimension_numbers = #tpu.dot_dimension_numbers<[1], [0], [0], [1], [0, 0, 1, 1], [], []>} : vector<256x7xbf16>, vector<7x64xbf16>, vector<256x64xf32> -> vector<256x64xf32>
    %34 = arith.addf %26, %33 : vector<256x64xf32>
    %c0_30 = arith.constant 0 : index
    %c0_31 = arith.constant 0 : index
    %35 = vector.load %arg3[%c0_30, %c0_31] : memref<256x1xf32, #tpu.memory_space<vmem>>, vector<256x1xf32>
    %36 = vector.broadcast %35 : vector<256x1xf32> to vector<256x64xf32>
    %37 = arith.addf %34, %36 : vector<256x64xf32>
    %38 = vector.extract_strided_slice %37 {offsets = [0, 0], sizes = [250, 50], strides = [1, 1]} : vector<256x64xf32> to vector<250x50xf32>
    %c0_32 = arith.constant 0 : index
    %c0_33 = arith.constant 0 : index
    %39 = vector.load %arg4[%c0_32, %c0_33] : memref<250x50xf32, #tpu.memory_space<vmem>>, vector<250x50xf32>
    tpu.vector_store %arg4[%c0_32, %c0_33], %38 {strides = array<i32>} : memref<250x50xf32, #tpu.memory_space<vmem>>, vector<250x50xf32>,
    return
  }
}

</mosaic_0001>

<bundles_post_ra>
// kernel: forward.1
= control target key start
LH: loop header
LB: loop body
LE: loop exit
PB: predicated region body
PF: predicated region fallthrough
CT: control target
= control target key end

     0   :  { %vm950_vm0 = vcmask 1042432   ;;  %vm951_vm1 = vcmask 1043456   ;;  %v3506_v29 = vmov 65535   ;;  %vm236_vm2 = vcmask 785408   ;;  %s5387_s0 = inlined_call_operand.vmem [shape: f32[224,7], index: 0, kind: input, shape index: {}]   ;;  %s5388_s2 = inlined_call_operand.vmem [shape: bf16[4,7,64], index: 2, kind: input, shape index: {}]   ;;  %s5389_s1 = inlined_call_operand.vmem [shape: bf16[4,256,224], index: 1, kind: input, shape index: {}]   ;;  %s5390_s3 = inlined_call_operand.vmem [shape: f32[256,1], index: 3, kind: input, shape index: {}]   ;;  %s5391_s4 = inlined_call_operand.vmem [shape: f32[250,50], index: 4, kind: output, shape index: {}]  }
   0x1   :  { %v32_v0 = vld [vmem:[%s5387_s0 + $0x70] sm:$0xff]  ;;  %v33_v1 = vld [vmem:[%s5387_s0 + $0x78] sm:$0xff]  ;;  %v30_v5 = vld [vmem:[%s5387_s0 + $0x60] sm:$0xff]  ;;  %v952_v30 = vsel %vm950_vm0, 4294967295, %v3506_v29  ;;  %vm901_vm3 = vcmask 56320   ;;  %vm2596_vm4 = vcmask 408576  }
   0x2   :  { %v44_v2 = vld [vmem:[%s5387_s0 + $0xd0] sm:$0xff]  ;;  %v3542_v3 = vpack.c.bf16 %v33_v1, %v32_v0  ;;  %v45_v4 = vld [vmem:[%s5387_s0 + $0xd8] sm:$0xff]  ;;  %v31_v6 = vld [vmem:[%s5387_s0 + $0x68] sm:$0xff]  ;;  %v3644_v37 = vsel %vm951_vm1, %v952_v30, 0  ;;  %vm2628_vm5 = vcmask 402432  }
   0x3   :  { %v3553_v7 = vpack.c.bf16 %v45_v4, %v44_v2  ;;  %v42_v8 = vld [vmem:[%s5387_s0 + $0xc0] sm:$0xff]  ;;  %v43_v9 = vld [vmem:[%s5387_s0 + $0xc8] sm:$0xff]  ;;  %v3563_v10 = vpack.c.bf16 %v31_v6, %v30_v5  ;;  %v28_v12 = vld [vmem:[%s5387_s0 + $0x50] sm:$0xff] }
   0x4   :  { %285 = vmatpush.bf16.msra.mxu0 %v3542_v3  ;;  %705 = vmatpush.bf16.msra.mxu2 %v3542_v3  ;;  %v3567_v11 = vpack.c.bf16 %v43_v9, %v42_v8  ;;  %v29_v13 = vld [vmem:[%s5387_s0 + $0x58] sm:$0xff]  ;;  %v40_v14 = vld [vmem:[%s5387_s0 + $0xb0] sm:$0xff]  ;;  %v26_v18 = vld [vmem:[%s5387_s0 + $0x40] sm:$0xff] }
   0x5   :  { %376 = vmatpush.bf16.msra.mxu1 %v3553_v7  ;;  %796 = vmatpush.bf16.msra.mxu3 %v3553_v7  ;;  %v41_v15 = vld [vmem:[%s5387_s0 + $0xb8] sm:$0xff]  ;;  %v3583_v16 = vpack.c.bf16 %v29_v13, %v28_v12  ;;  %v27_v19 = vld [vmem:[%s5387_s0 + $0x48] sm:$0xff]  ;;  %v38_v20 = vld [vmem:[%s5387_s0 + $0xa0] sm:$0xff] }
   0x6   :  { %v3587_v17 = vpack.c.bf16 %v41_v15, %v40_v14  ;;  %v39_v21 = vld [vmem:[%s5387_s0 + $0xa8] sm:$0xff]  ;;  %v3603_v22 = vpack.c.bf16 %v27_v19, %v26_v18  ;;  %v24_v24 = vld [vmem:[%s5387_s0 + $0x30] sm:$0xff]  ;;  %v25_v25 = vld [vmem:[%s5387_s0 + $0x38] sm:$0xff] }
   0x7   :  { %v3607_v23 = vpack.c.bf16 %v39_v21, %v38_v20  ;;  %v36_v26 = vld [vmem:[%s5387_s0 + $0x90] sm:$0xff]  ;;  %v37_v27 = vld [vmem:[%s5387_s0 + $0x98] sm:$0xff]  ;;  %v3623_v28 = vpack.c.bf16 %v25_v25, %v24_v24  ;;  %v22_v32 = vld [vmem:[%s5387_s0 + $0x20] sm:$0xff] }
   0x8   :  { %286 = vmatpush.bf16.msra.mxu0 %v3563_v10  ;;  %706 = vmatpush.bf16.msra.mxu2 %v3563_v10  ;;  %v3627_v31 = vpack.c.bf16 %v37_v27, %v36_v26  ;;  %v23_v33 = vld [vmem:[%s5387_s0 + $0x28] sm:$0xff]  ;;  %v34_v34 = vld [vmem:[%s5387_s0 + $0x80] sm:$0xff]  ;;  %v20_v44 = vld [vmem:[%s5387_s0 + $0x10] sm:$0xff] }
   0x9   :  { %377 = vmatpush.bf16.msra.mxu1 %v3567_v11  ;;  %797 = vmatpush.bf16.msra.mxu3 %v3567_v11  ;;  %v35_v35 = vld [vmem:[%s5387_s0 + $0x88] sm:$0xff]  ;;  %v479_v36 = vld [vmem:[%s5388_s2] sm:$0xf]  ;;  %v3648_v38 = vpack.c.bf16 %v23_v33, %v22_v32  ;;  %v3373_v39 = vld [vmem:[%s5389_s1 + $0x4] sm:$0xf] }
   0xa   :  { %v3655_v40 = vpack.c.bf16 %v35_v35, %v34_v34  ;;  %v2638_v41 = vld [vmem:[%s5389_s1 + $0x8] sm:$0xf0]  ;;  %v3405_v42 = vld [vmem:[%s5389_s1 + $0x104] sm:$0xf]  ;;  %v21_v45 = vld [vmem:[%s5387_s0 + $0x18] sm:$0xff]  ;;  %v1095_v46 = vand.u32 %v3644_v37, %v479_v36 }
   0xb   :  { %v2814_v43 = vld [vmem:[%s5389_s1 + $0x108] sm:$0xf0]  ;;  %v2641_v47 = vor.u32 %v3373_v39, %v2638_v41  ;;  %v47_v49 = vpack.c.bf16 %v21_v45, %v20_v44  ;;  %v18_v50 = vld [vmem:[%s5387_s0] sm:$0xff]  ;;  %v3374_v54 = vld [vmem:[%s5389_s1 + $0x4] sm:$0xf0] }
   0xc   :  { %287 = vmatpush.bf16.msra.mxu0 %v3583_v16  ;;  %707 = vmatpush.bf16.msra.mxu2 %v3583_v16  ;;  %v2817_v48 = vor.u32 %v3405_v42, %v2814_v43  ;;  %v19_v51 = vld [vmem:[%s5387_s0 + $0x8] sm:$0xff]  ;;  %v2636_v52 = vld [vmem:[%s5389_s1] sm:$0xf]  ;;  %v3375_v59 = vld [vmem:[%s5389_s1 + $0x14] sm:$0xf] }
   0xd   :  { %378 = vmatpush.bf16.msra.mxu1 %v3587_v17  ;;  %798 = vmatpush.bf16.msra.mxu3 %v3587_v17  ;;  %v46_v53 = vpack.c.bf16 %v19_v51, %v18_v50  ;;  %v2812_v55 = vld [vmem:[%s5389_s1 + $0x100] sm:$0xf]  ;;  %v3406_v56 = vld [vmem:[%s5389_s1 + $0x104] sm:$0xf0]  ;;  %v2637_v57 = vor.u32 %v3374_v54, %v2636_v52  ;;  %v2646_v60 = vld [vmem:[%s5389_s1 + $0x18] sm:$0xf0] }
   0xe   :  { %v2813_v58 = vor.u32 %v3406_v56, %v2812_v55  ;;  %v3407_v61 = vld [vmem:[%s5389_s1 + $0x114] sm:$0xf]  ;;  %v2822_v62 = vld [vmem:[%s5389_s1 + $0x118] sm:$0xf0]  ;;  %v2649_v63 = vor.u32 %v3375_v59, %v2646_v60  ;;  %v2644_v1 = vld [vmem:[%s5389_s1 + $0x10] sm:$0xf] }
   0xf   :  { %v2825_v0 = vor.u32 %v3407_v61, %v2822_v62  ;;  %v3376_v2 = vld [vmem:[%s5389_s1 + $0x14] sm:$0xf0]  ;;  %v3377_v8 = vld [vmem:[%s5389_s1 + $0x24] sm:$0xf]  ;;  %v2654_v9 = vld [vmem:[%s5389_s1 + $0x28] sm:$0xf0] }
  0x10   :  { %288 = vmatpush.bf16.msra.mxu0 %v3603_v22  ;;  %708 = vmatpush.bf16.msra.mxu2 %v3603_v22  ;;  %v3408_v4 = vld [vmem:[%s5389_s1 + $0x114] sm:$0xf0]  ;;  %v2645_v5 = vor.u32 %v3376_v2, %v2644_v1  ;;  %v2830_v12 = vld [vmem:[%s5389_s1 + $0x128] sm:$0xf0]  ;;  %v2657_v13 = vor.u32 %v3377_v8, %v2654_v9  ;;  %v2652_v15 = vld [vmem:[%s5389_s1 + $0x20] sm:$0xf] }
  0x11   :  { %379 = vmatpush.bf16.msra.mxu1 %v3607_v23  ;;  %799 = vmatpush.bf16.msra.mxu3 %v3607_v23  ;;  %v2828_v18 = vld [vmem:[%s5389_s1 + $0x120] sm:$0xf]  ;;  %v3410_v19 = vld [vmem:[%s5389_s1 + $0x124] sm:$0xf0]  ;;  %v2662_v24 = vld [vmem:[%s5389_s1 + $0x38] sm:$0xf0] }
  0x12   :  { %v2829_v21 = vor.u32 %v3410_v19, %v2828_v18  ;;  %v3411_v25 = vld [vmem:[%s5389_s1 + $0x134] sm:$0xf]  ;;  %v2660_v27 = vld [vmem:[%s5389_s1 + $0x30] sm:$0xf]  ;;  %v3381_v32 = vld [vmem:[%s5389_s1 + $0x44] sm:$0xf] }
  0x13   :  { %v2670_v33 = vld [vmem:[%s5389_s1 + $0x48] sm:$0xf0]  ;;  %v3413_v34 = vld [vmem:[%s5389_s1 + $0x144] sm:$0xf]  ;;  %v3382_v39 = vld [vmem:[%s5389_s1 + $0x44] sm:$0xf0] }
  0x14   :  { %289 = vmatpush.bf16.msra.mxu0 %v3623_v28  ;;  %709 = vmatpush.bf16.msra.mxu2 %v3623_v28  ;;  %v2673_v35 = vor.u32 %v3381_v32, %v2670_v33  ;;  %v3414_v41 = vld [vmem:[%s5389_s1 + $0x144] sm:$0xf0]  ;;  %v3383_v44 = vld [vmem:[%s5389_s1 + $0x54] sm:$0xf]  ;;  %v2678_v45 = vld [vmem:[%s5389_s1 + $0x58] sm:$0xf0] }
  0x15   :  { %380 = vmatpush.bf16.msra.mxu1 %v3627_v31  ;;  %800 = vmatpush.bf16.msra.mxu3 %v3627_v31  ;;  %v2676_v50 = vld [vmem:[%s5389_s1 + $0x50] sm:$0xf]  ;;  %v3384_v51 = vld [vmem:[%s5389_s1 + $0x54] sm:$0xf0]  ;;  %v3385_v56 = vld [vmem:[%s5389_s1 + $0x64] sm:$0xf] }
  0x16   :  { %v2852_v52 = vld [vmem:[%s5389_s1 + $0x150] sm:$0xf]  ;;  %v2677_v54 = vor.u32 %v3384_v51, %v2676_v50  ;;  %v2862_v59 = vld [vmem:[%s5389_s1 + $0x168] sm:$0xf0]  ;;  %v2684_v62 = vld [vmem:[%s5389_s1 + $0x60] sm:$0xf] }
  0x17   :  { %v3418_v1 = vld [vmem:[%s5389_s1 + $0x164] sm:$0xf0]  ;;  %v2870_v8 = vld [vmem:[%s5389_s1 + $0x178] sm:$0xf0]  ;;  %v2954_v19 = vld [vmem:[%s5388_s2 + $0x4] sm:$0xf] }
  0x18   :  { %290 = vmatpush.bf16.msra.mxu0 %v3648_v38  ;;  %710 = vmatpush.bf16.msra.mxu2 %v3648_v38  ;;  %v2884_v50 = vld [vmem:[%s5389_s1 + $0x190] sm:$0xf]  ;;  %v3424_v51 = vld [vmem:[%s5389_s1 + $0x194] sm:$0xf0] }
  0x19   :  { %381 = vmatpush.bf16.msra.mxu1 %v3655_v40  ;;  %801 = vmatpush.bf16.msra.mxu3 %v3655_v40 }
  0x1c   :  { %2762 = vmatmul.msk.bf16.vlgmr.msra.gmra.mxu1 %vm236_vm2, %v2641_v47  ;;  %2938 = vmatmul.msk.bf16.vlgmr.msra.gmra.mxu3 %vm236_vm2, %v2817_v48  ;;  %v2854_v47 = vld [vmem:[%s5389_s1 + $0x158] sm:$0xf0]  ;;  %v2681_v48 = vor.u32 %v3383_v44, %v2678_v45 }
  0x1d   :  { %1104 = vmatpush.bf16.msrb.mxu3 %v1095_v46  ;;  %291 = vmatpush.bf16.msra.mxu0 %v47_v49  ;;  %v3415_v46 = vld [vmem:[%s5389_s1 + $0x154] sm:$0xf] }
  0x1e   :  { %711 = vmatpush.bf16.msra.mxu2 %v47_v49 }
  0x21   :  { %2004 = vmatpush.bf16.msra.mxu3 %v3542_v3  ;;  %292 = vmatpush.bf16.msra.mxu0 %v46_v53 }
  0x22   :  { %712 = vmatpush.bf16.msra.mxu2 %v46_v53 }
  0x24   :  { %293 = vmatmul.bf16.vlgmr.msra.gmra.mxu0 %v2637_v57  ;;  %v2686_v57 = vld [vmem:[%s5389_s1 + $0x68] sm:$0xf0] }
  0x25   :  { %1411 = vmatpush.bf16.msrb.mxu0 %v3542_v3  ;;  %2005 = vmatpush.bf16.msra.mxu3 %v3563_v10  ;;  %v2820_v3 = vld [vmem:[%s5389_s1 + $0x110] sm:$0xf]  ;;  %v2689_v60 = vor.u32 %v3385_v56, %v2686_v57  ;;  %v2885_v57 = vor.u32 %v3424_v51, %v2884_v50 }
  0x26   :  { %1502 = vmatpush.bf16.msrb.mxu2 %v3553_v7  ;;  %v2821_v6 = vor.u32 %v3408_v4, %v2820_v3  ;;  %v3387_v4 = vld [vmem:[%s5389_s1 + $0x74] sm:$0xf] }
  0x27   :  { %713 = vmatmul.bf16.vlgmr.msra.gmra.mxu2 %v2813_v58  ;;  %v3417_v58 = vld [vmem:[%s5389_s1 + $0x164] sm:$0xf] }
  0x28   :  { %v2865_v61 = vor.u32 %v3417_v58, %v2862_v59 }
  0x29   :  { %1412 = vmatpush.bf16.msrb.mxu0 %v3563_v10  ;;  %2006 = vmatpush.bf16.msra.mxu3 %v3583_v16  ;;  %v3409_v10 = vld [vmem:[%s5389_s1 + $0x124] sm:$0xf] }
  0x2a   :  { %1503 = vmatpush.bf16.msrb.mxu2 %v3567_v11  ;;  %v2833_v14 = vor.u32 %v3409_v10, %v2830_v12  ;;  %v2692_v12 = vld [vmem:[%s5389_s1 + $0x70] sm:$0xf] }
  0x2c   :  { %2763 = vmatmul.msk.bf16.gmra.mxu1 %vm236_vm2, %v2649_v63  ;;  %2939 = vmatmul.msk.bf16.gmra.mxu3 %vm236_vm2, %v2825_v0  ;;  %v3386_v63 = vld [vmem:[%s5389_s1 + $0x64] sm:$0xf0]  ;;  %v2860_v0 = vld [vmem:[%s5389_s1 + $0x160] sm:$0xf] }
  0x2d   :  { %1413 = vmatpush.bf16.msrb.mxu0 %v3583_v16  ;;  %2007 = vmatpush.bf16.msra.mxu3 %v3603_v22  ;;  %v3378_v16 = vld [vmem:[%s5389_s1 + $0x24] sm:$0xf0]  ;;  %v2685_v2 = vor.u32 %v3386_v63, %v2684_v62  ;;  %v2861_v3 = vor.u32 %v3418_v1, %v2860_v0  ;;  %v3393_v62 = vld [vmem:[%s5389_s1 + $0xa4] sm:$0xf]  ;;  %v2718_v63 = vld [vmem:[%s5389_s1 + $0xa8] sm:$0xf0] }
  0x2e   :  { %1504 = vmatpush.bf16.msrb.mxu2 %v3587_v17  ;;  %v2653_v20 = vor.u32 %v3378_v16, %v2652_v15  ;;  %v3420_v15 = vld [vmem:[%s5389_s1 + $0x174] sm:$0xf0]  ;;  %v3425_v0 = vld [vmem:[%s5389_s1 + $0x1a4] sm:$0xf]  ;;  %v2894_v1 = vld [vmem:[%s5389_s1 + $0x1a8] sm:$0xf0] }
  0x31   :  { %1414 = vmatpush.bf16.msrb.mxu0 %v3603_v22  ;;  %2008 = vmatpush.bf16.msra.mxu3 %v3623_v28  ;;  %v3379_v22 = vld [vmem:[%s5389_s1 + $0x34] sm:$0xf] }
  0x32   :  { %1505 = vmatpush.bf16.msrb.mxu2 %v3607_v23 }
  0x34   :  { %298 = vmatmul.bf16.gmra.mxu0 %v2645_v5  ;;  %v2694_v5 = vld [vmem:[%s5389_s1 + $0x78] sm:$0xf0] }
  0x35   :  { %1415 = vmatpush.bf16.msrb.mxu0 %v3623_v28  ;;  %2009 = vmatpush.bf16.msra.mxu3 %v3648_v38  ;;  %v3380_v28 = vld [vmem:[%s5389_s1 + $0x34] sm:$0xf0]  ;;  %v2697_v9 = vor.u32 %v3387_v4, %v2694_v5  ;;  %v2721_v4 = vor.u32 %v3393_v62, %v2718_v63  ;;  %v2897_v5 = vor.u32 %v3425_v0, %v2894_v1 }
  0x36   :  { %1506 = vmatpush.bf16.msrb.mxu2 %v3627_v31  ;;  %v2661_v29 = vor.u32 %v3380_v28, %v2660_v27  ;;  %v2700_v27 = vld [vmem:[%s5389_s1 + $0x80] sm:$0xf]  ;;  %v3390_v28 = vld [vmem:[%s5389_s1 + $0x84] sm:$0xf0] }
  0x37   :  { %718 = vmatmul.bf16.gmra.mxu2 %v2821_v6  ;;  %v3419_v6 = vld [vmem:[%s5389_s1 + $0x174] sm:$0xf] }
  0x38   :  { %v2873_v10 = vor.u32 %v3419_v6, %v2870_v8 }
  0x39   :  { %1416 = vmatpush.bf16.msrb.mxu0 %v3648_v38  ;;  %2010 = vmatpush.bf16.msra.mxu3 %v47_v49  ;;  %v2668_v38 = vld [vmem:[%s5389_s1 + $0x40] sm:$0xf] }
  0x3a   :  { %1507 = vmatpush.bf16.msrb.mxu2 %v3655_v40  ;;  %v2669_v42 = vor.u32 %v3382_v39, %v2668_v38  ;;  %v3423_v38 = vld [vmem:[%s5389_s1 + $0x194] sm:$0xf]  ;;  %v2886_v39 = vld [vmem:[%s5389_s1 + $0x198] sm:$0xf0] }
  0x3c   :  { %2764 = vmatmul.msk.bf16.gmra.mxu1 %vm236_vm2, %v2657_v13  ;;  %2940 = vmatmul.msk.bf16.gmra.mxu3 %vm236_vm2, %v2833_v14  ;;  %v3388_v13 = vld [vmem:[%s5389_s1 + $0x74] sm:$0xf0]  ;;  %v2868_v14 = vld [vmem:[%s5389_s1 + $0x170] sm:$0xf] }
  0x3d   :  { %1417 = vmatpush.bf16.msrb.mxu0 %v47_v49  ;;  %2011 = vmatpush.bf16.msra.mxu3 %v46_v53  ;;  %v2857_v49 = vor.u32 %v3415_v46, %v2854_v47  ;;  %v2693_v16 = vor.u32 %v3388_v13, %v2692_v12  ;;  %v2869_v18 = vor.u32 %v3420_v15, %v2868_v14  ;;  %v2716_v12 = vld [vmem:[%s5389_s1 + $0xa0] sm:$0xf]  ;;  %v3394_v13 = vld [vmem:[%s5389_s1 + $0xa4] sm:$0xf0] }
  0x3e   :  { %v2892_v14 = vld [vmem:[%s5389_s1 + $0x1a0] sm:$0xf]  ;;  %v3426_v15 = vld [vmem:[%s5389_s1 + $0x1a4] sm:$0xf0] }
  0x41   :  { %1418 = vmatpush.bf16.msrb.mxu0 %v46_v53  ;;  %v3416_v53 = vld [vmem:[%s5389_s1 + $0x154] sm:$0xf0] }
  0x42   :  { %v2853_v55 = vor.u32 %v3416_v53, %v2852_v52 }
  0x44   :  { %303 = vmatmul.bf16.gmra.mxu0 %v2653_v20  ;;  %v955_v20 = vand.u32 %v2954_v19, %v3644_v37 }
  0x45   :  { %2095 = vmatpush.bf16.msra.mxu0 %v3553_v7  ;;  %v2838_v7 = vld [vmem:[%s5389_s1 + $0x138] sm:$0xf0] }
  0x46   :  { %v2841_v26 = vor.u32 %v3411_v25, %v2838_v7  ;;  %v2878_v25 = vld [vmem:[%s5389_s1 + $0x188] sm:$0xf0]  ;;  %964 = vmatpush.bf16.msrb.mxu1 %v955_v20 }
  0x47   :  { %723 = vmatmul.bf16.gmra.mxu2 %v2829_v21  ;;  %v3389_v21 = vld [vmem:[%s5389_s1 + $0x84] sm:$0xf] }
  0x49   :  { %2096 = vmatpush.bf16.msra.mxu0 %v3567_v11  ;;  %v2665_v11 = vor.u32 %v3379_v22, %v2662_v24  ;;  %v2702_v22 = vld [vmem:[%s5389_s1 + $0x88] sm:$0xf0]  ;;  %v3421_v24 = vld [vmem:[%s5389_s1 + $0x184] sm:$0xf] }
  0x4a   :  { %v2705_v7 = vor.u32 %v3389_v21, %v2702_v22  ;;  %v2717_v21 = vor.u32 %v3394_v13, %v2716_v12  ;;  %v2893_v22 = vor.u32 %v3426_v15, %v2892_v14  ;;  %v2908_v12 = vld [vmem:[%s5389_s1 + $0x1c0] sm:$0xf]  ;;  %v3430_v13 = vld [vmem:[%s5389_s1 + $0x1c4] sm:$0xf0] }
  0x4c   :  { %2765 = vmatmul.msk.bf16.gmra.mxu1 %vm236_vm2, %v2665_v11  ;;  %2941 = vmatmul.msk.bf16.gmra.mxu3 %vm236_vm2, %v2841_v26  ;;  %v2881_v11 = vor.u32 %v3421_v24, %v2878_v25 }
  0x4d   :  { %2097 = vmatpush.bf16.msra.mxu0 %v3587_v17  ;;  %v2836_v17 = vld [vmem:[%s5389_s1 + $0x130] sm:$0xf] }
  0x51   :  { %2098 = vmatpush.bf16.msra.mxu0 %v3607_v23  ;;  %v3412_v23 = vld [vmem:[%s5389_s1 + $0x134] sm:$0xf0] }
  0x52   :  { %v2837_v30 = vor.u32 %v3412_v23, %v2836_v17  ;;  %v2876_v17 = vld [vmem:[%s5389_s1 + $0x180] sm:$0xf]  ;;  %v3422_v23 = vld [vmem:[%s5389_s1 + $0x184] sm:$0xf0] }
  0x53   :  { %v2877_v32 = vor.u32 %v3422_v23, %v2876_v17  ;;  %v2902_v17 = vld [vmem:[%s5389_s1 + $0x1b8] sm:$0xf0] }
  0x54   :  { %308 = vmatmul.bf16.gmra.mxu0 %v2661_v29 }
  0x55   :  { %2099 = vmatpush.bf16.msra.mxu0 %v3627_v31  ;;  %v2846_v31 = vld [vmem:[%s5389_s1 + $0x148] sm:$0xf0] }
  0x56   :  { %v2849_v36 = vor.u32 %v3413_v34, %v2846_v31 }
  0x57   :  { %728 = vmatmul.bf16.gmra.mxu2 %v2837_v30  ;;  %v2701_v30 = vor.u32 %v3390_v28, %v2700_v27  ;;  %v2726_v27 = vld [vmem:[%s5389_s1 + $0xb8] sm:$0xf0]  ;;  %v3427_v28 = vld [vmem:[%s5389_s1 + $0x1b4] sm:$0xf] }
  0x59   :  { %2100 = vmatpush.bf16.msra.mxu0 %v3655_v40  ;;  %v2844_v40 = vld [vmem:[%s5389_s1 + $0x140] sm:$0xf] }
  0x5a   :  { %v2845_v43 = vor.u32 %v3414_v41, %v2844_v40 }
  0x5c   :  { %2766 = vmatmul.msk.bf16.gmra.mxu1 %vm236_vm2, %v2673_v35  ;;  %2942 = vmatmul.msk.bf16.gmra.mxu3 %vm236_vm2, %v2849_v36  ;;  %v3391_v35 = vld [vmem:[%s5389_s1 + $0x94] sm:$0xf]  ;;  %v2710_v36 = vld [vmem:[%s5389_s1 + $0x98] sm:$0xf0] }
  0x64   :  { %313 = vmatmul.bf16.gmra.mxu0 %v2669_v42  ;;  %v2713_v42 = vor.u32 %v3391_v35, %v2710_v36 }
  0x67   :  { %733 = vmatmul.bf16.gmra.mxu2 %v2845_v43  ;;  %v2889_v43 = vor.u32 %v3423_v38, %v2886_v39  ;;  %v2724_v38 = vld [vmem:[%s5389_s1 + $0xb0] sm:$0xf]  ;;  %v3396_v39 = vld [vmem:[%s5389_s1 + $0xb4] sm:$0xf0] }
  0x6c   :  { %2767 = vmatmul.msk.bf16.gmra.mxu1 %vm236_vm2, %v2681_v48  ;;  %2943 = vmatmul.msk.bf16.gmra.mxu3 %vm236_vm2, %v2857_v49  ;;  %v2708_v48 = vld [vmem:[%s5389_s1 + $0x90] sm:$0xf]  ;;  %v3392_v49 = vld [vmem:[%s5389_s1 + $0x94] sm:$0xf0] }
  0x6d   :  { %v2709_v56 = vor.u32 %v3392_v49, %v2708_v48  ;;  %v2725_v48 = vor.u32 %v3396_v39, %v2724_v38 }
  0x74   :  { %318 = vmatmul.bf16.gmra.mxu0 %v2677_v54 }
  0x77   :  { %738 = vmatmul.bf16.gmra.mxu2 %v2853_v55 }
  0x7c   :  { %2768 = vmatmul.msk.bf16.gmra.mxu1 %vm236_vm2, %v2689_v60  ;;  %2944 = vmatmul.msk.bf16.gmra.mxu3 %vm236_vm2, %v2865_v61 }
  0x84   :  { %323 = vmatmul.bf16.gmra.mxu0 %v2685_v2 }
  0x87   :  { %743 = vmatmul.bf16.gmra.mxu2 %v2861_v3 }
  0x8c   :  { %2769 = vmatmul.msk.bf16.gmra.mxu1 %vm236_vm2, %v2697_v9  ;;  %2945 = vmatmul.msk.bf16.gmra.mxu3 %vm236_vm2, %v2873_v10 }
  0x94   :  { %328 = vmatmul.bf16.gmra.mxu0 %v2693_v16 }
  0x97   :  { %748 = vmatmul.bf16.gmra.mxu2 %v2869_v18 }
  0x99   :  { %v383_v26 = vpop.f32.mrf.mxu1 }
  0x9c   :  { %2770 = vmatmul.msk.bf16.gmra.mxu1 %vm236_vm2, %v2705_v7  ;;  %2946 = vmatmul.msk.bf16.gmra.mxu3 %vm236_vm2, %v2881_v11 }
  0x9f   :  { %v803_v29 = vpop.f32.mrf.mxu3 }
  0xa1   :  { %v294_v33 = vpop.f32.mrf.mxu0  ;;  %v385_v34 = vpop.f32.mrf.mxu1 }
  0xa2   :  { %v3933_v31 = vadd.f32 %v383_v26, %v294_v33  ;;  %v3395_v26 = vld [vmem:[%s5389_s1 + $0xb4] sm:$0xf] }
  0xa4   :  { %333 = vmatmul.bf16.gmra.mxu0 %v2701_v30  ;;  %v2729_v30 = vor.u32 %v3395_v26, %v2726_v27 }
  0xa7   :  { %753 = vmatmul.bf16.gmra.mxu2 %v2877_v32  ;;  %v805_v41 = vpop.f32.mrf.mxu3  ;;  %v2905_v32 = vor.u32 %v3427_v28, %v2902_v17  ;;  %v3399_v28 = vld [vmem:[%s5389_s1 + $0xd4] sm:$0xf]  ;;  %v2742_v17 = vld [vmem:[%s5389_s1 + $0xd8] sm:$0xf0] }
  0xa9   :  { %v296_v44 = vpop.f32.mrf.mxu0  ;;  %v388_v45 = vpop.f32.mrf.mxu1 }
  0xaa   :  { %v714_v40 = vpop.f32.mrf.mxu2  ;;  %v3947_v46 = vadd.f32 %v385_v34, %v296_v44 }
  0xab   :  { %v3965_v54 = vadd.f32 %v803_v29, %v714_v40  ;;  %v2900_v40 = vld [vmem:[%s5389_s1 + $0x1b0] sm:$0xf] }
  0xac   :  { %v463_v47 = vpack.c.bf16 %v3947_v46, %v3933_v31  ;;  %2771 = vmatmul.msk.bf16.gmra.mxu1 %vm236_vm2, %v2713_v42  ;;  %2947 = vmatmul.msk.bf16.gmra.mxu3 %vm236_vm2, %v2889_v43 }
  0xaf   :  { %v808_v53 = vpop.f32.mrf.mxu3 }
  0xb1   :  { %v299_v58 = vpop.f32.mrf.mxu0  ;;  %v390_v59 = vpop.f32.mrf.mxu1 }
  0xb2   :  { %v716_v52 = vpop.f32.mrf.mxu2  ;;  %v3971_v61 = vadd.f32 %v388_v45, %v299_v58  ;;  %v3429_v58 = vld [vmem:[%s5389_s1 + $0x1c4] sm:$0xf] }
  0xb3   :  { %v3967_v55 = vadd.f32 %v805_v41, %v716_v52  ;;  %v3428_v41 = vld [vmem:[%s5389_s1 + $0x1b4] sm:$0xf0] }
  0xb4   :  { %338 = vmatmul.bf16.gmra.mxu0 %v2709_v56  ;;  %v2901_v49 = vor.u32 %v3428_v41, %v2900_v40  ;;  %v3397_v56 = vld [vmem:[%s5389_s1 + $0xc4] sm:$0xf] }
  0xb5   :  { %v883_v60 = vpack.c.bf16 %v3967_v55, %v3965_v54  ;;  %v3023_v54 = vld [vmem:[%s5389_s1 + $0x208] sm:$0xf0] }
  0xb7   :  { %758 = vmatmul.bf16.gmra.mxu2 %v2885_v57  ;;  %v810_v3 = vpop.f32.mrf.mxu3  ;;  %v2734_v57 = vld [vmem:[%s5389_s1 + $0xc8] sm:$0xf0] }
  0xb8   :  { %v2737_v0 = vor.u32 %v3397_v56, %v2734_v57 }
  0xb9   :  { %v301_v6 = vpop.f32.mrf.mxu0  ;;  %v393_v8 = vpop.f32.mrf.mxu1 }
  0xba   :  { %v719_v2 = vpop.f32.mrf.mxu2  ;;  %v3985_v9 = vadd.f32 %v390_v59, %v301_v6  ;;  %v2910_v59 = vld [vmem:[%s5389_s1 + $0x1c8] sm:$0xf0]  ;;  %v2732_v6 = vld [vmem:[%s5389_s1 + $0xc0] sm:$0xf] }
  0xbb   :  { %v4003_v19 = vadd.f32 %v808_v53, %v719_v2  ;;  %v2913_v1 = vor.u32 %v3429_v58, %v2910_v59 }
  0xbc   :  { %v464_v10 = vpack.c.bf16 %v3985_v9, %v3971_v61  ;;  %2772 = vmatmul.msk.bf16.gmra.mxu1 %vm236_vm2, %v2721_v4  ;;  %2948 = vmatmul.msk.bf16.gmra.mxu3 %vm236_vm2, %v2897_v5 }
  0xbf   :  { %v813_v18 = vpop.f32.mrf.mxu3 }
  0xc1   :  { %v304_v24 = vpop.f32.mrf.mxu0  ;;  %v395_v25 = vpop.f32.mrf.mxu1 }
  0xc2   :  { %v721_v16 = vpop.f32.mrf.mxu2  ;;  %v4009_v11 = vadd.f32 %v393_v8, %v304_v24  ;;  %v3398_v8 = vld [vmem:[%s5389_s1 + $0xc4] sm:$0xf0] }
  0xc3   :  { %v4005_v20 = vadd.f32 %v810_v3, %v721_v16 }
  0xc4   :  { %343 = vmatmul.bf16.gmra.mxu0 %v2717_v21  ;;  %v2733_v21 = vor.u32 %v3398_v8, %v2732_v6  ;;  %v3433_v6 = vld [vmem:[%s5389_s1 + $0x1e4] sm:$0xf]  ;;  %v2926_v8 = vld [vmem:[%s5389_s1 + $0x1e8] sm:$0xf0] }
  0xc5   :  { %v884_v7 = vpack.c.bf16 %v4005_v20, %v4003_v19  ;;  %v3031_v19 = vld [vmem:[%s5389_s1 + $0x218] sm:$0xf0] }
  0xc7   :  { %763 = vmatmul.bf16.gmra.mxu2 %v2893_v22  ;;  %v815_v29 = vpop.f32.mrf.mxu3  ;;  %v2909_v22 = vor.u32 %v3430_v13, %v2908_v12 }
  0xc9   :  { %v306_v33 = vpop.f32.mrf.mxu0  ;;  %v398_v34 = vpop.f32.mrf.mxu1 }
  0xca   :  { %v724_v23 = vpop.f32.mrf.mxu2  ;;  %v4023_v35 = vadd.f32 %v395_v25, %v306_v33  ;;  %v2745_v33 = vor.u32 %v3399_v28, %v2742_v17  ;;  %v2748_v28 = vld [vmem:[%s5389_s1 + $0xe0] sm:$0xf]  ;;  %v3402_v17 = vld [vmem:[%s5389_s1 + $0xe4] sm:$0xf0] }
  0xcb   :  { %v4041_v44 = vadd.f32 %v813_v18, %v724_v23  ;;  %v3431_v23 = vld [vmem:[%s5389_s1 + $0x1d4] sm:$0xf] }
  0xcc   :  { %v465_v36 = vpack.c.bf16 %v4023_v35, %v4009_v11  ;;  %2773 = vmatmul.msk.bf16.gmra.mxu1 %vm236_vm2, %v2729_v30  ;;  %2949 = vmatmul.msk.bf16.gmra.mxu3 %vm236_vm2, %v2905_v32 }
  0xcf   :  { %v818_v43 = vpop.f32.mrf.mxu3 }
  0xd1   :  { %v309_v50 = vpop.f32.mrf.mxu0  ;;  %v400_v51 = vpop.f32.mrf.mxu1 }
  0xd2   :  { %v726_v42 = vpop.f32.mrf.mxu2  ;;  %v4047_v53 = vadd.f32 %v398_v34, %v309_v50 }
  0xd3   :  { %v4043_v45 = vadd.f32 %v815_v29, %v726_v42  ;;  %v2918_v29 = vld [vmem:[%s5389_s1 + $0x1d8] sm:$0xf0]  ;;  %v2740_v42 = vld [vmem:[%s5389_s1 + $0xd0] sm:$0xf] }
  0xd4   :  { %348 = vmatmul.bf16.gmra.mxu0 %v2725_v48  ;;  %v2921_v34 = vor.u32 %v3431_v23, %v2918_v29  ;;  %v2916_v48 = vld [vmem:[%s5389_s1 + $0x1d0] sm:$0xf]  ;;  %v2924_v23 = vld [vmem:[%s5389_s1 + $0x1e0] sm:$0xf]  ;;  %v3434_v29 = vld [vmem:[%s5389_s1 + $0x1e4] sm:$0xf0] }
  0xd5   :  { %v885_v52 = vpack.c.bf16 %v4043_v45, %v4041_v44  ;;  %v3039_v44 = vld [vmem:[%s5389_s1 + $0x228] sm:$0xf0] }
  0xd7   :  { %768 = vmatmul.bf16.gmra.mxu2 %v2901_v49  ;;  %v820_v63 = vpop.f32.mrf.mxu3  ;;  %v3432_v49 = vld [vmem:[%s5389_s1 + $0x1d4] sm:$0xf0] }
  0xd8   :  { %v2917_v59 = vor.u32 %v3432_v49, %v2916_v48 }
  0xd9   :  { %v311_v2 = vpop.f32.mrf.mxu0  ;;  %v403_v3 = vpop.f32.mrf.mxu1 }
  0xda   :  { %v729_v62 = vpop.f32.mrf.mxu2  ;;  %v4061_v4 = vadd.f32 %v400_v51, %v311_v2  ;;  %v3401_v2 = vld [vmem:[%s5389_s1 + $0xe4] sm:$0xf] }
  0xdb   :  { %v4079_v16 = vadd.f32 %v818_v43, %v729_v62  ;;  %v3400_v43 = vld [vmem:[%s5389_s1 + $0xd4] sm:$0xf0] }
  0xdc   :  { %v466_v5 = vpack.c.bf16 %v4061_v4, %v4047_v53  ;;  %2774 = vmatmul.msk.bf16.gmra.mxu1 %vm236_vm2, %v2737_v0  ;;  %2950 = vmatmul.msk.bf16.gmra.mxu3 %vm236_vm2, %v2913_v1  ;;  %v2741_v58 = vor.u32 %v3400_v43, %v2740_v42 }
  0xdf   :  { %v823_v15 = vpop.f32.mrf.mxu3 }
  0xe1   :  { %v314_v24 = vpop.f32.mrf.mxu0  ;;  %v405_v25 = vpop.f32.mrf.mxu1 }
  0xe2   :  { %v731_v14 = vpop.f32.mrf.mxu2  ;;  %v4085_v27 = vadd.f32 %v403_v3, %v314_v24  ;;  %v2750_v3 = vld [vmem:[%s5389_s1 + $0xe8] sm:$0xf0] }
  0xe3   :  { %v4081_v18 = vadd.f32 %v820_v63, %v731_v14  ;;  %v2753_v14 = vor.u32 %v3401_v2, %v2750_v3 }
  0xe4   :  { %353 = vmatmul.bf16.gmra.mxu0 %v2733_v21 }
  0xe5   :  { %v886_v26 = vpack.c.bf16 %v4081_v18, %v4079_v16  ;;  %v3047_v16 = vld [vmem:[%s5389_s1 + $0x238] sm:$0xf0] }
  0xe7   :  { %773 = vmatmul.bf16.gmra.mxu2 %v2909_v22  ;;  %v825_v32 = vpop.f32.mrf.mxu3 }
  0xe9   :  { %v316_v38 = vpop.f32.mrf.mxu0  ;;  %v408_v39 = vpop.f32.mrf.mxu1 }
  0xea   :  { %v734_v30 = vpop.f32.mrf.mxu2  ;;  %v4099_v40 = vadd.f32 %v405_v25, %v316_v38  ;;  %v2749_v38 = vor.u32 %v3402_v17, %v2748_v28 }
  0xeb   :  { %v4117_v56 = vadd.f32 %v823_v15, %v734_v30  ;;  %v2929_v15 = vor.u32 %v3433_v6, %v2926_v8 }
  0xec   :  { %v467_v41 = vpack.c.bf16 %v4099_v40, %v4085_v27  ;;  %2775 = vmatmul.msk.bf16.gmra.mxu1 %vm236_vm2, %v2745_v33  ;;  %2951 = vmatmul.msk.bf16.gmra.mxu3 %vm236_vm2, %v2921_v34 }
  0xef   :  { %v828_v51 = vpop.f32.mrf.mxu3 }
  0xf1   :  { %v319_v62 = vpop.f32.mrf.mxu0  ;;  %v410_v63 = vpop.f32.mrf.mxu1 }
  0xf2   :  { %v736_v50 = vpop.f32.mrf.mxu2  ;;  %v4123_v1 = vadd.f32 %v408_v39, %v319_v62  ;;  %v2925_v39 = vor.u32 %v3434_v29, %v2924_v23 }
  0xf3   :  { %v4119_v57 = vadd.f32 %v825_v32, %v736_v50  ;;  %v3403_v50 = vld [vmem:[%s5389_s1 + $0xf4] sm:$0xf] }
  0xf4   :  { %358 = vmatmul.bf16.gmra.mxu0 %v2741_v58  ;;  %v3435_v58 = vld [vmem:[%s5389_s1 + $0x1f4] sm:$0xf] }
  0xf5   :  { %v887_v0 = vpack.c.bf16 %v4119_v57, %v4117_v56  ;;  %v3055_v56 = vld [vmem:[%s5389_s1 + $0x248] sm:$0xf0] }
  0xf7   :  { %778 = vmatmul.bf16.gmra.mxu2 %v2917_v59  ;;  %v830_v13 = vpop.f32.mrf.mxu3  ;;  %v2934_v59 = vld [vmem:[%s5389_s1 + $0x1f8] sm:$0xf0] }
  0xf8   :  { %v2937_v3 = vor.u32 %v3435_v58, %v2934_v59 }
  0xf9   :  { %v321_v21 = vpop.f32.mrf.mxu0  ;;  %v413_v22 = vpop.f32.mrf.mxu1 }
  0xfa   :  { %v739_v12 = vpop.f32.mrf.mxu2  ;;  %v4137_v24 = vadd.f32 %v410_v63, %v321_v21  ;;  %v2932_v21 = vld [vmem:[%s5389_s1 + $0x1f0] sm:$0xf] }
  0xfb   :  { %v4155_v33 = vadd.f32 %v828_v51, %v739_v12  ;;  %v2758_v51 = vld [vmem:[%s5389_s1 + $0xf8] sm:$0xf0] }
  0xfc   :  { %v468_v25 = vpack.c.bf16 %v4137_v24, %v4123_v1  ;;  %2776 = vmatmul.msk.bf16.gmra.mxu1 %vm236_vm2, %v2753_v14  ;;  %2952 = vmatmul.msk.bf16.gmra.mxu3 %vm236_vm2, %v2929_v15  ;;  %v2761_v2 = vor.u32 %v3403_v50, %v2758_v51  ;;  %v2756_v14 = vld [vmem:[%s5389_s1 + $0xf0] sm:$0xf]  ;;  %v3404_v15 = vld [vmem:[%s5389_s1 + $0xf4] sm:$0xf0] }
  0xff   :  { %v833_v32 = vpop.f32.mrf.mxu3 }
 0x101   :  { %v324_v42 = vpop.f32.mrf.mxu0  ;;  %v415_v43 = vpop.f32.mrf.mxu1 }
 0x102   :  { %v741_v30 = vpop.f32.mrf.mxu2  ;;  %v4161_v49 = vadd.f32 %v413_v22, %v324_v42  ;;  %v3436_v22 = vld [vmem:[%s5389_s1 + $0x1f4] sm:$0xf0] }
 0x103   :  { %v4157_v34 = vadd.f32 %v830_v13, %v741_v30  ;;  %v2757_v30 = vor.u32 %v3404_v15, %v2756_v14 }
 0x104   :  { %363 = vmatmul.bf16.gmra.mxu0 %v2749_v38  ;;  %v2933_v38 = vor.u32 %v3436_v22, %v2932_v21 }
 0x105   :  { %v888_v48 = vpack.c.bf16 %v4157_v34, %v4155_v33  ;;  %v3063_v33 = vld [vmem:[%s5389_s1 + $0x258] sm:$0xf0] }
 0x107   :  { %783 = vmatmul.bf16.gmra.mxu2 %v2925_v39  ;;  %v835_v63 = vpop.f32.mrf.mxu3 }
 0x109   :  { %v326_v6 = vpop.f32.mrf.mxu0  ;;  %v418_v8 = vpop.f32.mrf.mxu1 }
 0x10a   :  { %v744_v62 = vpop.f32.mrf.mxu2  ;;  %v4175_v12 = vadd.f32 %v415_v43, %v326_v6  ;;  %v3437_v6 = vld [vmem:[%s5389_s1 + $0x204] sm:$0xf] }
 0x10b   :  { %v4193_v23 = vadd.f32 %v833_v32, %v744_v62 }
 0x10c   :  { %v469_v13 = vpack.c.bf16 %v4175_v12, %v4161_v49  ;;  %2777 = vmatmul.msk.bf16.gmra.mxu1 %vm236_vm2, %v2761_v2  ;;  %2953 = vmatmul.msk.bf16.gmra.mxu3 %vm236_vm2, %v2937_v3  ;;  %v3438_v3 = vld [vmem:[%s5389_s1 + $0x204] sm:$0xf0] }
 0x10f   :  { %v838_v17 = vpop.f32.mrf.mxu3 }
 0x111   :  { %v329_v39 = vpop.f32.mrf.mxu0  ;;  %v420_v42 = vpop.f32.mrf.mxu1 }
 0x112   :  { %v746_v28 = vpop.f32.mrf.mxu2  ;;  %v4199_v50 = vadd.f32 %v418_v8, %v329_v39  ;;  %v3026_v8 = vor.u32 %v3437_v6, %v3023_v54 }
 0x113   :  { %v4195_v29 = vadd.f32 %v835_v63, %v746_v28  ;;  %v3021_v63 = vld [vmem:[%s5389_s1 + $0x200] sm:$0xf] }
 0x114   :  { %368 = vmatmul.bf16.gmra.mxu0 %v2757_v30 }
 0x115   :  { %v889_v43 = vpack.c.bf16 %v4195_v29, %v4193_v23  ;;  %v3071_v23 = vld [vmem:[%s5389_s1 + $0x268] sm:$0xf0] }
 0x117   :  { %788 = vmatmul.bf16.gmra.mxu2 %v2933_v38  ;;  %v840_v58 = vpop.f32.mrf.mxu3 }
 0x119   :  { %v331_v59 = vpop.f32.mrf.mxu0  ;;  %v423_v2 = vpop.f32.mrf.mxu1 }
 0x11a   :  { %v749_v51 = vpop.f32.mrf.mxu2  ;;  %v4201_v32 = vadd.f32 %v420_v42, %v331_v59  ;;  %v3439_v59 = vld [vmem:[%s5389_s1 + $0x214] sm:$0xf] }
 0x11b   :  { %v4225_v46 = vadd.f32 %v838_v17, %v749_v51  ;;  %v3029_v51 = vld [vmem:[%s5389_s1 + $0x210] sm:$0xf] }
 0x11c   :  { %v470_v62 = vpack.c.bf16 %v4201_v32, %v4199_v50  ;;  %2955 = vmatmul.msk.bf16.vlgmr.msrb.gmra.mxu1 %vm901_vm3, %v883_v60  ;;  %2971 = vmatmul.msk.bf16.vlgmr.msrb.gmra.mxu3 %vm901_vm3, %v463_v47  ;;  %v3022_v60 = vor.u32 %v3438_v3, %v3021_v63  ;;  %v3079_v50 = vld [vmem:[%s5389_s1 + $0x278] sm:$0xf0] }
 0x11f   :  { %v843_v31 = vpop.f32.mrf.mxu3 }
 0x121   :  { %v334_v14 = vpop.f32.mrf.mxu0  ;;  %v425_v15 = vpop.f32.mrf.mxu1 }
 0x122   :  { %v751_v55 = vpop.f32.mrf.mxu2  ;;  %v4231_v22 = vadd.f32 %v423_v2, %v334_v14  ;;  %v3034_v2 = vor.u32 %v3439_v59, %v3031_v19 }
 0x123   :  { %v4227_v47 = vadd.f32 %v840_v58, %v751_v55  ;;  %v3440_v58 = vld [vmem:[%s5389_s1 + $0x214] sm:$0xf0] }
 0x124   :  { %1419 = vmatmul.bf16.vlgmr.msrb.gmra.mxu0 %v3022_v60 }
 0x125   :  { %v890_v21 = vpack.c.bf16 %v4227_v47, %v4225_v46  ;;  %v3451_v46 = vld [vmem:[%s5389_s1 + $0x274] sm:$0xf] }
 0x127   :  { %3147 = vmatmul.msk.bf16.vlgmr.msrb.gmra.mxu2 %vm236_vm2, %v3026_v8  ;;  %v845_v30 = vpop.f32.mrf.mxu3 }
 0x129   :  { %v336_v38 = vpop.f32.mrf.mxu0  ;;  %v428_v39 = vpop.f32.mrf.mxu1 }
 0x12a   :  { %v754_v28 = vpop.f32.mrf.mxu2  ;;  %v4234_v17 = vadd.f32 %v425_v15, %v336_v38  ;;  %v3441_v38 = vld [vmem:[%s5389_s1 + $0x224] sm:$0xf] }
 0x12b   :  { %v4258_v9 = vadd.f32 %v843_v31, %v754_v28  ;;  %v3037_v28 = vld [vmem:[%s5389_s1 + $0x220] sm:$0xf] }
 0x12c   :  { %v471_v42 = vpack.c.bf16 %v4234_v17, %v4231_v22  ;;  %2956 = vmatmul.msk.bf16.gmra.mxu1 %vm901_vm3, %v884_v7  ;;  %2972 = vmatmul.msk.bf16.gmra.mxu3 %vm901_vm3, %v464_v10  ;;  %v3030_v7 = vor.u32 %v3440_v58, %v3029_v51 }
 0x12f   :  { %v848_v61 = vpop.f32.mrf.mxu3 }
 0x131   :  { %v339_v63 = vpop.f32.mrf.mxu0  ;;  %v430_v3 = vpop.f32.mrf.mxu1 }
 0x132   :  { %v756_v20 = vpop.f32.mrf.mxu2  ;;  %v4264_v54 = vadd.f32 %v428_v39, %v339_v63  ;;  %v3042_v39 = vor.u32 %v3441_v38, %v3039_v44 }
 0x133   :  { %v4260_v10 = vadd.f32 %v845_v30, %v756_v20  ;;  %v3442_v30 = vld [vmem:[%s5389_s1 + $0x224] sm:$0xf0] }
 0x134   :  { %1424 = vmatmul.bf16.gmra.mxu0 %v3030_v7 }
 0x135   :  { %v891_v6 = vpack.c.bf16 %v4260_v10, %v4258_v9  ;;  %v3087_v9 = vld [vmem:[%s5389_s1 + $0x288] sm:$0xf0] }
 0x137   :  { %3148 = vmatmul.msk.bf16.gmra.mxu2 %vm236_vm2, %v3034_v2  ;;  %v850_v60 = vpop.f32.mrf.mxu3 }
 0x139   :  { %v341_v8 = vpop.f32.mrf.mxu0  ;;  %v433_v14 = vpop.f32.mrf.mxu1 }
 0x13a   :  { %v759_v55 = vpop.f32.mrf.mxu2  ;;  %v4267_v31 = vadd.f32 %v430_v3, %v341_v8  ;;  %v3443_v8 = vld [vmem:[%s5389_s1 + $0x234] sm:$0xf] }
 0x13b   :  { %v4291_v35 = vadd.f32 %v848_v61, %v759_v55  ;;  %v3045_v55 = vld [vmem:[%s5389_s1 + $0x230] sm:$0xf] }
 0x13c   :  { %v472_v15 = vpack.c.bf16 %v4267_v31, %v4264_v54  ;;  %2957 = vmatmul.msk.bf16.gmra.mxu1 %vm901_vm3, %v885_v52  ;;  %2973 = vmatmul.msk.bf16.gmra.mxu3 %vm901_vm3, %v465_v36  ;;  %v3038_v52 = vor.u32 %v3442_v30, %v3037_v28 }
 0x13f   :  { %v853_v11 = vpop.f32.mrf.mxu3 }
 0x141   :  { %v344_v51 = vpop.f32.mrf.mxu0  ;;  %v435_v58 = vpop.f32.mrf.mxu1 }
 0x142   :  { %v761_v45 = vpop.f32.mrf.mxu2  ;;  %v4297_v19 = vadd.f32 %v433_v14, %v344_v51  ;;  %v3050_v14 = vor.u32 %v3443_v8, %v3047_v16 }
 0x143   :  { %v4293_v36 = vadd.f32 %v850_v60, %v761_v45  ;;  %v3444_v60 = vld [vmem:[%s5389_s1 + $0x234] sm:$0xf0] }
 0x144   :  { %1429 = vmatmul.bf16.gmra.mxu0 %v3038_v52 }
 0x145   :  { %v892_v59 = vpack.c.bf16 %v4293_v36, %v4291_v35  ;;  %v3095_v35 = vld [vmem:[%s5389_s1 + $0x298] sm:$0xf0] }
 0x147   :  { %3149 = vmatmul.msk.bf16.gmra.mxu2 %vm236_vm2, %v3042_v39  ;;  %v855_v7 = vpop.f32.mrf.mxu3 }
 0x149   :  { %v346_v2 = vpop.f32.mrf.mxu0  ;;  %v438_v63 = vpop.f32.mrf.mxu1 }
 0x14a   :  { %v764_v20 = vpop.f32.mrf.mxu2  ;;  %v4300_v61 = vadd.f32 %v435_v58, %v346_v2  ;;  %v3445_v2 = vld [vmem:[%s5389_s1 + $0x244] sm:$0xf] }
 0x14b   :  { %v4324_v4 = vadd.f32 %v853_v11, %v764_v20  ;;  %v3053_v20 = vld [vmem:[%s5389_s1 + $0x240] sm:$0xf] }
 0x14c   :  { %v473_v3 = vpack.c.bf16 %v4300_v61, %v4297_v19  ;;  %2958 = vmatmul.msk.bf16.gmra.mxu1 %vm901_vm3, %v886_v26  ;;  %2974 = vmatmul.msk.bf16.gmra.mxu3 %vm901_vm3, %v466_v5  ;;  %v3046_v26 = vor.u32 %v3444_v60, %v3045_v55 }
 0x14f   :  { %v858_v53 = vpop.f32.mrf.mxu3 }
 0x151   :  { %v349_v28 = vpop.f32.mrf.mxu0  ;;  %v440_v30 = vpop.f32.mrf.mxu1 }
 0x152   :  { %v766_v18 = vpop.f32.mrf.mxu2  ;;  %v4330_v44 = vadd.f32 %v438_v63, %v349_v28  ;;  %v3058_v63 = vor.u32 %v3445_v2, %v3055_v56 }
 0x153   :  { %v4326_v5 = vadd.f32 %v855_v7, %v766_v18  ;;  %v3446_v7 = vld [vmem:[%s5389_s1 + $0x244] sm:$0xf0] }
 0x154   :  { %1434 = vmatmul.bf16.gmra.mxu0 %v3046_v26 }
 0x155   :  { %v893_v38 = vpack.c.bf16 %v4326_v5, %v4324_v4  ;;  %v3103_v4 = vld [vmem:[%s5389_s1 + $0x2a8] sm:$0xf0] }
 0x157   :  { %3150 = vmatmul.msk.bf16.gmra.mxu2 %vm236_vm2, %v3050_v14  ;;  %v860_v52 = vpop.f32.mrf.mxu3 }
 0x159   :  { %v351_v39 = vpop.f32.mrf.mxu0  ;;  %v443_v51 = vpop.f32.mrf.mxu1 }
 0x15a   :  { %v769_v45 = vpop.f32.mrf.mxu2  ;;  %v4333_v11 = vadd.f32 %v440_v30, %v351_v39  ;;  %v3447_v39 = vld [vmem:[%s5389_s1 + $0x254] sm:$0xf] }
 0x15b   :  { %v4357_v40 = vadd.f32 %v858_v53, %v769_v45  ;;  %v3061_v45 = vld [vmem:[%s5389_s1 + $0x250] sm:$0xf] }
 0x15c   :  { %v474_v58 = vpack.c.bf16 %v4333_v11, %v4330_v44  ;;  %2959 = vmatmul.msk.bf16.gmra.mxu1 %vm901_vm3, %v887_v0  ;;  %2975 = vmatmul.msk.bf16.gmra.mxu3 %vm901_vm3, %v467_v41  ;;  %v3054_v0 = vor.u32 %v3446_v7, %v3053_v20 }
 0x15f   :  { %v863_v27 = vpop.f32.mrf.mxu3 }
 0x161   :  { %v354_v55 = vpop.f32.mrf.mxu0  ;;  %v445_v60 = vpop.f32.mrf.mxu1 }
 0x162   :  { %v771_v57 = vpop.f32.mrf.mxu2  ;;  %v4363_v16 = vadd.f32 %v443_v51, %v354_v55  ;;  %v3066_v51 = vor.u32 %v3447_v39, %v3063_v33 }
 0x163   :  { %v4359_v41 = vadd.f32 %v860_v52, %v771_v57  ;;  %v3448_v52 = vld [vmem:[%s5389_s1 + $0x254] sm:$0xf0] }
 0x164   :  { %1439 = vmatmul.bf16.gmra.mxu0 %v3054_v0 }
 0x165   :  { %v894_v8 = vpack.c.bf16 %v4359_v41, %v4357_v40  ;;  %v3111_v40 = vld [vmem:[%s5389_s1 + $0x2b8] sm:$0xf0] }
 0x167   :  { %3151 = vmatmul.msk.bf16.gmra.mxu2 %vm236_vm2, %v3058_v63  ;;  %v865_v26 = vpop.f32.mrf.mxu3 }
 0x169   :  { %v356_v14 = vpop.f32.mrf.mxu0  ;;  %v448_v28 = vpop.f32.mrf.mxu1 }
 0x16a   :  { %v774_v18 = vpop.f32.mrf.mxu2  ;;  %v4366_v53 = vadd.f32 %v445_v60, %v356_v14  ;;  %v3449_v14 = vld [vmem:[%s5389_s1 + $0x264] sm:$0xf] }
 0x16b   :  { %v4390_v24 = vadd.f32 %v863_v27, %v774_v18  ;;  %v3069_v18 = vld [vmem:[%s5389_s1 + $0x260] sm:$0xf] }
 0x16c   :  { %v475_v30 = vpack.c.bf16 %v4366_v53, %v4363_v16  ;;  %2960 = vmatmul.msk.bf16.gmra.mxu1 %vm901_vm3, %v888_v48  ;;  %2976 = vmatmul.msk.bf16.gmra.mxu3 %vm901_vm3, %v468_v25  ;;  %v3062_v48 = vor.u32 %v3448_v52, %v3061_v45 }
 0x16f   :  { %v868_v1 = vpop.f32.mrf.mxu3 }
 0x171   :  { %v359_v20 = vpop.f32.mrf.mxu0  ;;  %v450_v7 = vpop.f32.mrf.mxu1 }
 0x172   :  { %v776_v34 = vpop.f32.mrf.mxu2  ;;  %v4396_v56 = vadd.f32 %v448_v28, %v359_v20  ;;  %v3074_v28 = vor.u32 %v3449_v14, %v3071_v23 }
 0x173   :  { %v4392_v25 = vadd.f32 %v865_v26, %v776_v34  ;;  %v3450_v26 = vld [vmem:[%s5389_s1 + $0x264] sm:$0xf0] }
 0x174   :  { %1444 = vmatmul.bf16.gmra.mxu0 %v3062_v48 }
 0x175   :  { %v895_v2 = vpack.c.bf16 %v4392_v25, %v4390_v24  ;;  %v3119_v24 = vld [vmem:[%s5389_s1 + $0x2c8] sm:$0xf0] }
 0x177   :  { %3152 = vmatmul.msk.bf16.gmra.mxu2 %vm236_vm2, %v3066_v51  ;;  %v870_v0 = vpop.f32.mrf.mxu3 }
 0x179   :  { %v361_v63 = vpop.f32.mrf.mxu0  ;;  %v453_v55 = vpop.f32.mrf.mxu1 }
 0x17a   :  { %v779_v57 = vpop.f32.mrf.mxu2  ;;  %v4399_v27 = vadd.f32 %v450_v7, %v361_v63  ;;  %v3452_v63 = vld [vmem:[%s5389_s1 + $0x274] sm:$0xf0] }
 0x17b   :  { %v4423_v12 = vadd.f32 %v868_v1, %v779_v57  ;;  %v3077_v57 = vld [vmem:[%s5389_s1 + $0x270] sm:$0xf] }
 0x17c   :  { %v476_v60 = vpack.c.bf16 %v4399_v27, %v4396_v56  ;;  %2961 = vmatmul.msk.bf16.gmra.mxu1 %vm901_vm3, %v889_v43  ;;  %2977 = vmatmul.msk.bf16.gmra.mxu3 %vm901_vm3, %v469_v13  ;;  %v3070_v43 = vor.u32 %v3450_v26, %v3069_v18  ;;  %v3078_v18 = vor.u32 %v3452_v63, %v3077_v57  ;;  %v3454_v57 = vld [vmem:[%s5389_s1 + $0x284] sm:$0xf0] }
 0x17d   :  { %v3082_v26 = vor.u32 %v3451_v46, %v3079_v50 }
 0x17f   :  { %v873_v49 = vpop.f32.mrf.mxu3 }
 0x181   :  { %v364_v45 = vpop.f32.mrf.mxu0  ;;  %v455_v52 = vpop.f32.mrf.mxu1 }
 0x182   :  { %v781_v29 = vpop.f32.mrf.mxu2  ;;  %v4429_v33 = vadd.f32 %v453_v55, %v364_v45 }
 0x183   :  { %v4425_v13 = vadd.f32 %v870_v0, %v781_v29  ;;  %v3356_v0 = vld [vmem:[%s5388_s2 + $0xc] sm:$0xf] }
 0x184   :  { %1449 = vmatmul.bf16.gmra.mxu0 %v3070_v43  ;;  %v2249_v32 = vand.u32 %v3356_v0, %v3644_v37  ;;  %v3453_v0 = vld [vmem:[%s5389_s1 + $0x284] sm:$0xf] }
 0x185   :  { %v896_v39 = vpack.c.bf16 %v4425_v13, %v4423_v12  ;;  %v3090_v46 = vor.u32 %v3453_v0, %v3087_v9  ;;  %v3127_v12 = vld [vmem:[%s5389_s1 + $0x2d8] sm:$0xf0] }
 0x186   :  { %2258 = vmatpush.bf16.msra.mxu2 %v2249_v32 }
 0x187   :  { %3153 = vmatmul.msk.bf16.gmra.mxu2 %vm236_vm2, %v3074_v28  ;;  %v875_v48 = vpop.f32.mrf.mxu3  ;;  %v3163_v28 = vld [vmem:[%s5388_s2 + $0x8] sm:$0xf] }
 0x188   :  { %v1656_v45 = vand.u32 %v3163_v28, %v3644_v37  ;;  %v3085_v37 = vld [vmem:[%s5389_s1 + $0x280] sm:$0xf]  ;;  %v3093_v28 = vld [vmem:[%s5389_s1 + $0x290] sm:$0xf] }
 0x189   :  { %v366_v51 = vpop.f32.mrf.mxu0  ;;  %v458_v20 = vpop.f32.mrf.mxu1  ;;  %v3086_v17 = vor.u32 %v3454_v57, %v3085_v37 }
 0x18a   :  { %v784_v34 = vpop.f32.mrf.mxu2  ;;  %v4432_v1 = vadd.f32 %v455_v52, %v366_v51  ;;  %1665 = vmatpush.bf16.msra.mxu1 %v1656_v45  ;;  %v3456_v45 = vld [vmem:[%s5389_s1 + $0x294] sm:$0xf0] }
 0x18b   :  { %v3094_v31 = vor.u32 %v3456_v45, %v3093_v28 }
 0x18c   :  { %v477_v7 = vpack.c.bf16 %v4432_v1, %v4429_v33  ;;  %2962 = vmatmul.msk.bf16.gmra.mxu1 %vm901_vm3, %v890_v21  ;;  %2978 = vmatmul.msk.bf16.gmra.mxu3 %vm901_vm3, %v470_v62  ;;  %v4460_v21 = vadd.f32 %v873_v49, %v784_v34 }
 0x18f   :  { %v878_v47 = vpop.f32.mrf.mxu3 }
 0x191   :  { %v369_v14 = vpop.f32.mrf.mxu0  ;;  %v460_v23 = vpop.f32.mrf.mxu1 }
 0x192   :  { %v786_v62 = vpop.f32.mrf.mxu2  ;;  %v4466_v43 = vadd.f32 %v458_v20, %v369_v14 }
 0x193   :  { %v4462_v55 = vadd.f32 %v875_v48, %v786_v62 }
 0x194   :  { %1454 = vmatmul.bf16.gmra.mxu0 %v3078_v18 }
 0x195   :  { %v897_v29 = vpack.c.bf16 %v4462_v55, %v4460_v21  ;;  %v3135_v21 = vld [vmem:[%s5389_s1 + $0x2e8] sm:$0xf0] }
 0x197   :  { %3154 = vmatmul.msk.bf16.gmra.mxu2 %vm236_vm2, %v3082_v26  ;;  %v880_v52 = vpop.f32.mrf.mxu3 }
 0x199   :  { %v371_v34 = vpop.f32.mrf.mxu0  ;;  %v966_v48 = vpop.f32.mrf.mxu1 }
 0x19a   :  { %v789_v49 = vpop.f32.mrf.mxu2  ;;  %v4473_v51 = vadd.f32 %v460_v23, %v371_v34 }
 0x19c   :  { %v478_v20 = vpack.c.bf16 %v4473_v51, %v4466_v43  ;;  %2963 = vmatmul.msk.bf16.gmra.mxu1 %vm901_vm3, %v891_v6  ;;  %2979 = vmatmul.msk.bf16.gmra.mxu3 %vm901_vm3, %v471_v42  ;;  %v4497_v42 = vadd.f32 %v878_v47, %v789_v49  ;;  %v3455_v49 = vld [vmem:[%s5389_s1 + $0x294] sm:$0xf] }
 0x19d   :  { %v3098_v34 = vor.u32 %v3455_v49, %v3095_v35 }
 0x19f   :  { %v1106_v22 = vpop.f32.mrf.mxu3 }
 0x1a0   :  { %v4501_v63 = vadd.f32 %v1106_v22, %v966_v48 }
 0x1a1   :  { %v968_v50 = vpop.f32.mrf.mxu1  ;;  %v1420_v32 = vpop.f32.mrf.mxu0 }
 0x1a2   :  { %v791_v10 = vpop.f32.mrf.mxu2 }
 0x1a3   :  { %v4499_v6 = vadd.f32 %v880_v52, %v791_v10 }
 0x1a4   :  { %1459 = vmatmul.bf16.gmra.mxu0 %v3086_v17 }
 0x1a5   :  { %v898_v62 = vpack.c.bf16 %v4499_v6, %v4497_v42  ;;  %v3143_v42 = vld [vmem:[%s5389_s1 + $0x2f8] sm:$0xf0] }
 0x1a7   :  { %3155 = vmatmul.msk.bf16.gmra.mxu2 %vm236_vm2, %v3090_v46  ;;  %v1108_v18 = vpop.f32.mrf.mxu3  ;;  %v3101_v46 = vld [vmem:[%s5389_s1 + $0x2a0] sm:$0xf] }
 0x1a8   :  { %v4506_v14 = vadd.f32 %v1108_v18, %v968_v50  ;;  %v3458_v50 = vld [vmem:[%s5389_s1 + $0x2a4] sm:$0xf0] }
 0x1a9   :  { %v971_v23 = vpop.f32.mrf.mxu1  ;;  %v1422_v47 = vpop.f32.mrf.mxu0  ;;  %v3102_v61 = vor.u32 %v3458_v50, %v3101_v46 }
 0x1aa   :  { %v1509_v26 = vpop.f32.mrf.mxu2 }
 0x1ac   :  { %2964 = vmatmul.msk.bf16.gmra.mxu1 %vm901_vm3, %v892_v59  ;;  %2980 = vmatmul.msk.bf16.gmra.mxu3 %vm901_vm3, %v472_v15  ;;  %v4528_v15 = vadd.f32 %v1509_v26, %v1420_v32  ;;  %v3457_v32 = vld [vmem:[%s5389_s1 + $0x2a4] sm:$0xf] }
 0x1ad   :  { %v3106_v26 = vor.u32 %v3457_v32, %v3103_v4 }
 0x1af   :  { %v1111_v36 = vpop.f32.mrf.mxu3 }
 0x1b0   :  { %v4530_v59 = vadd.f32 %v1111_v36, %v971_v23 }
 0x1b1   :  { %v973_v48 = vpop.f32.mrf.mxu1  ;;  %v1425_v37 = vpop.f32.mrf.mxu0 }
 0x1b2   :  { %v1511_v54 = vpop.f32.mrf.mxu2 }
 0x1b3   :  { %v4532_v52 = vadd.f32 %v1511_v54, %v1422_v47 }
 0x1b4   :  { %1464 = vmatmul.bf16.gmra.mxu0 %v3094_v31  ;;  %v3109_v31 = vld [vmem:[%s5389_s1 + $0x2b0] sm:$0xf] }
 0x1b5   :  { %v1589_v57 = vpack.c.bf16 %v4532_v52, %v4528_v15 }
 0x1b7   :  { %3156 = vmatmul.msk.bf16.gmra.mxu2 %vm236_vm2, %v3098_v34  ;;  %v1113_v0 = vpop.f32.mrf.mxu3  ;;  %v3460_v34 = vld [vmem:[%s5389_s1 + $0x2b4] sm:$0xf0] }
 0x1b8   :  { %v4537_v10 = vadd.f32 %v1113_v0, %v973_v48  ;;  %v3459_v48 = vld [vmem:[%s5389_s1 + $0x2b4] sm:$0xf]  ;;  %v3110_v11 = vor.u32 %v3460_v34, %v3109_v31 }
 0x1b9   :  { %v976_v22 = vpop.f32.mrf.mxu1  ;;  %v1427_v17 = vpop.f32.mrf.mxu0  ;;  %v3114_v0 = vor.u32 %v3459_v48, %v3111_v40 }
 0x1ba   :  { %v1514_v9 = vpop.f32.mrf.mxu2 }
 0x1bc   :  { %2965 = vmatmul.msk.bf16.gmra.mxu1 %vm901_vm3, %v893_v38  ;;  %2981 = vmatmul.msk.bf16.gmra.mxu3 %vm901_vm3, %v473_v3  ;;  %v4559_v3 = vadd.f32 %v1514_v9, %v1425_v37 }
 0x1bf   :  { %v1116_v5 = vpop.f32.mrf.mxu3 }
 0x1c0   :  { %v4561_v38 = vadd.f32 %v1116_v5, %v976_v22 }
 0x1c1   :  { %v978_v23 = vpop.f32.mrf.mxu1  ;;  %v1430_v47 = vpop.f32.mrf.mxu0 }
 0x1c2   :  { %v1516_v19 = vpop.f32.mrf.mxu2 }
 0x1c3   :  { %v4563_v18 = vadd.f32 %v1516_v19, %v1427_v17  ;;  %v3117_v19 = vld [vmem:[%s5389_s1 + $0x2c0] sm:$0xf] }
 0x1c4   :  { %1469 = vmatmul.bf16.gmra.mxu0 %v3102_v61  ;;  %v3462_v61 = vld [vmem:[%s5389_s1 + $0x2c4] sm:$0xf0] }
 0x1c5   :  { %v1590_v28 = vpack.c.bf16 %v4563_v18, %v4559_v3  ;;  %v3118_v53 = vor.u32 %v3462_v61, %v3117_v19 }
 0x1c7   :  { %3157 = vmatmul.msk.bf16.gmra.mxu2 %vm236_vm2, %v3106_v26  ;;  %v1118_v45 = vpop.f32.mrf.mxu3  ;;  %v3461_v26 = vld [vmem:[%s5389_s1 + $0x2c4] sm:$0xf] }
 0x1c8   :  { %v4568_v35 = vadd.f32 %v1118_v45, %v978_v23 }
 0x1c9   :  { %v981_v36 = vpop.f32.mrf.mxu1  ;;  %v1432_v54 = vpop.f32.mrf.mxu0 }
 0x1ca   :  { %v1519_v49 = vpop.f32.mrf.mxu2 }
 0x1cc   :  { %2966 = vmatmul.msk.bf16.gmra.mxu1 %vm901_vm3, %v894_v8  ;;  %2982 = vmatmul.msk.bf16.gmra.mxu3 %vm901_vm3, %v474_v58  ;;  %v4590_v58 = vadd.f32 %v1519_v49, %v1430_v47  ;;  %v3122_v47 = vor.u32 %v3461_v26, %v3119_v24  ;;  %v3133_v24 = vld [vmem:[%s5389_s1 + $0x2e0] sm:$0xf] }
 0x1cf   :  { %v1121_v41 = vpop.f32.mrf.mxu3 }
 0x1d0   :  { %v4592_v8 = vadd.f32 %v1121_v41, %v981_v36  ;;  %v3125_v41 = vld [vmem:[%s5389_s1 + $0x2d0] sm:$0xf] }
 0x1d1   :  { %v983_v9 = vpop.f32.mrf.mxu1  ;;  %v1435_v22 = vpop.f32.mrf.mxu0 }
 0x1d2   :  { %v1521_v44 = vpop.f32.mrf.mxu2 }
 0x1d3   :  { %v4594_v37 = vadd.f32 %v1521_v44, %v1432_v54  ;;  %v3464_v44 = vld [vmem:[%s5389_s1 + $0x2d4] sm:$0xf0] }
 0x1d4   :  { %1474 = vmatmul.bf16.gmra.mxu0 %v3110_v11  ;;  %v3463_v11 = vld [vmem:[%s5389_s1 + $0x2d4] sm:$0xf]  ;;  %v3126_v27 = vor.u32 %v3464_v44, %v3125_v41 }
 0x1d5   :  { %v1591_v17 = vpack.c.bf16 %v4594_v37, %v4590_v58 }
 0x1d7   :  { %3158 = vmatmul.msk.bf16.gmra.mxu2 %vm236_vm2, %v3114_v0  ;;  %v1123_v46 = vpop.f32.mrf.mxu3 }
 0x1d8   :  { %v4599_v32 = vadd.f32 %v1123_v46, %v983_v9  ;;  %v3130_v9 = vor.u32 %v3463_v11, %v3127_v12  ;;  %v3141_v11 = vld [vmem:[%s5389_s1 + $0x2f0] sm:$0xf]  ;;  %v3468_v12 = vld [vmem:[%s5389_s1 + $0x2f4] sm:$0xf0] }
 0x1d9   :  { %v986_v4 = vpop.f32.mrf.mxu1  ;;  %v1437_v5 = vpop.f32.mrf.mxu0  ;;  %v3142_v51 = vor.u32 %v3468_v12, %v3141_v11 }
 0x1da   :  { %v1524_v50 = vpop.f32.mrf.mxu2 }
 0x1dc   :  { %2967 = vmatmul.msk.bf16.gmra.mxu1 %vm901_vm3, %v895_v2  ;;  %2983 = vmatmul.msk.bf16.gmra.mxu3 %vm901_vm3, %v475_v30  ;;  %v4621_v30 = vadd.f32 %v1524_v50, %v1435_v22 }
 0x1df   :  { %v1126_v25 = vpop.f32.mrf.mxu3 }
 0x1e0   :  { %v4623_v2 = vadd.f32 %v1126_v25, %v986_v4  ;;  %v3466_v25 = vld [vmem:[%s5389_s1 + $0x2e4] sm:$0xf0] }
 0x1e1   :  { %v988_v45 = vpop.f32.mrf.mxu1  ;;  %v1440_v49 = vpop.f32.mrf.mxu0  ;;  %v3134_v1 = vor.u32 %v3466_v25, %v3133_v24 }
 0x1e2   :  { %v1526_v16 = vpop.f32.mrf.mxu2 }
 0x1e3   :  { %v4625_v23 = vadd.f32 %v1526_v16, %v1437_v5  ;;  %v3465_v16 = vld [vmem:[%s5389_s1 + $0x2e4] sm:$0xf] }
 0x1e4   :  { %1479 = vmatmul.bf16.gmra.mxu0 %v3118_v53 }
 0x1e5   :  { %v1592_v36 = vpack.c.bf16 %v4625_v23, %v4621_v30 }
 0x1e7   :  { %3159 = vmatmul.msk.bf16.gmra.mxu2 %vm236_vm2, %v3122_v47  ;;  %v1128_v54 = vpop.f32.mrf.mxu3  ;;  %v3138_v47 = vor.u32 %v3465_v16, %v3135_v21 }
 0x1e8   :  { %v4630_v34 = vadd.f32 %v1128_v54, %v988_v45 }
 0x1e9   :  { %v991_v48 = vpop.f32.mrf.mxu1  ;;  %v1442_v40 = vpop.f32.mrf.mxu0 }
 0x1ea   :  { %v1529_v31 = vpop.f32.mrf.mxu2 }
 0x1ec   :  { %2968 = vmatmul.msk.bf16.gmra.mxu1 %vm901_vm3, %v896_v39  ;;  %2984 = vmatmul.msk.bf16.gmra.mxu3 %vm901_vm3, %v476_v60  ;;  %v4652_v60 = vadd.f32 %v1529_v31, %v1440_v49 }
 0x1ef   :  { %v1131_v13 = vpop.f32.mrf.mxu3 }
 0x1f0   :  { %v4654_v39 = vadd.f32 %v1131_v13, %v991_v48  ;;  %v3467_v13 = vld [vmem:[%s5389_s1 + $0x2f4] sm:$0xf] }
 0x1f1   :  { %v993_v22 = vpop.f32.mrf.mxu1  ;;  %v1445_v46 = vpop.f32.mrf.mxu0 }
 0x1f2   :  { %v1531_v56 = vpop.f32.mrf.mxu2 }
 0x1f3   :  { %v4656_v0 = vadd.f32 %v1531_v56, %v1442_v40 }
 0x1f4   :  { %1484 = vmatmul.bf16.gmra.mxu0 %v3126_v27  ;;  %v3146_v27 = vor.u32 %v3467_v13, %v3143_v42 }
 0x1f5   :  { %v1593_v50 = vpack.c.bf16 %v4656_v0, %v4652_v60 }
 0x1f7   :  { %3160 = vmatmul.msk.bf16.gmra.mxu2 %vm236_vm2, %v3130_v9  ;;  %v1133_v4 = vpop.f32.mrf.mxu3 }
 0x1f8   :  { %v4661_v19 = vadd.f32 %v1133_v4, %v993_v22  ;;  %v3214_v4 = vld [vmem:[%s5389_s1 + $0x300] sm:$0xf] }
 0x1f9   :  { %v996_v61 = vpop.f32.mrf.mxu1  ;;  %v1447_v26 = vpop.f32.mrf.mxu0 }
 0x1fa   :  { %v1534_v5 = vpop.f32.mrf.mxu2 }
 0x1fc   :  { %2969 = vmatmul.msk.bf16.gmra.mxu1 %vm901_vm3, %v897_v29  ;;  %2985 = vmatmul.msk.bf16.gmra.mxu3 %vm901_vm3, %v477_v7  ;;  %v4683_v7 = vadd.f32 %v1534_v5, %v1445_v46  ;;  %v3470_v5 = vld [vmem:[%s5389_s1 + $0x304] sm:$0xf0] }
 0x1fd   :  { %v3215_v25 = vor.u32 %v3470_v5, %v3214_v4 }
 0x1ff   :  { %v1136_v55 = vpop.f32.mrf.mxu3 }
 0x200   :  { %v4685_v29 = vadd.f32 %v1136_v55, %v996_v61  ;;  %v3469_v55 = vld [vmem:[%s5389_s1 + $0x304] sm:$0xf] }
 0x201   :  { %v998_v45 = vpop.f32.mrf.mxu1  ;;  %v1450_v49 = vpop.f32.mrf.mxu0 }
 0x202   :  { %v1536_v33 = vpop.f32.mrf.mxu2 }
 0x203   :  { %v4687_v53 = vadd.f32 %v1536_v33, %v1447_v26  ;;  %v3216_v33 = vld [vmem:[%s5389_s1 + $0x308] sm:$0xf0] }
 0x204   :  { %1489 = vmatmul.bf16.gmra.mxu0 %v3134_v1  ;;  %v3219_v15 = vor.u32 %v3469_v55, %v3216_v33 }
 0x205   :  { %v1594_v54 = vpack.c.bf16 %v4687_v53, %v4683_v7 }
 0x207   :  { %3161 = vmatmul.msk.bf16.gmra.mxu2 %vm236_vm2, %v3138_v47  ;;  %v1138_v31 = vpop.f32.mrf.mxu3 }
 0x208   :  { %v4692_v40 = vadd.f32 %v1138_v31, %v998_v45 }
 0x209   :  { %v1001_v41 = vpop.f32.mrf.mxu1  ;;  %v1452_v44 = vpop.f32.mrf.mxu0 }
 0x20a   :  { %v1539_v48 = vpop.f32.mrf.mxu2 }
 0x20c   :  { %2970 = vmatmul.msk.bf16.gmra.mxu1 %vm901_vm3, %v898_v62  ;;  %2986 = vmatmul.msk.bf16.gmra.mxu3 %vm901_vm3, %v478_v20  ;;  %v4714_v20 = vadd.f32 %v1539_v48, %v1450_v49 }
 0x20f   :  { %v1141_v6 = vpop.f32.mrf.mxu3 }
 0x210   :  { %v4716_v62 = vadd.f32 %v1141_v6, %v1001_v41  ;;  %v3222_v41 = vld [vmem:[%s5389_s1 + $0x310] sm:$0xf] }
 0x211   :  { %v1003_v9 = vpop.f32.mrf.mxu1  ;;  %v1455_v22 = vpop.f32.mrf.mxu0 }
 0x212   :  { %v1541_v43 = vpop.f32.mrf.mxu2 }
 0x213   :  { %v4718_v56 = vadd.f32 %v1541_v43, %v1452_v44  ;;  %v3472_v44 = vld [vmem:[%s5389_s1 + $0x314] sm:$0xf0] }
 0x214   :  { %1494 = vmatmul.bf16.gmra.mxu0 %v3142_v51  ;;  %v3223_v42 = vor.u32 %v3472_v44, %v3222_v41  ;;  %v3471_v51 = vld [vmem:[%s5389_s1 + $0x314] sm:$0xf] }
 0x215   :  { %v1595_v46 = vpack.c.bf16 %v4718_v56, %v4714_v20 }
 0x217   :  { %3162 = vmatmul.msk.bf16.gmra.mxu2 %vm236_vm2, %v3146_v27  ;;  %v1143_v61 = vpop.f32.mrf.mxu3  ;;  %v3224_v27 = vld [vmem:[%s5389_s1 + $0x318] sm:$0xf0] }
 0x218   :  { %v4729_v24 = vadd.f32 %v1143_v61, %v1003_v9  ;;  %v3227_v3 = vor.u32 %v3471_v51, %v3224_v27  ;;  %v3476_v51 = vld [vmem:[%s5389_s1 + $0x334] sm:$0xf0] }
 0x219   :  { %v1006_v16 = vpop.f32.mrf.mxu1  ;;  %v1457_v21 = vpop.f32.mrf.mxu0 }
 0x21a   :  { %v1544_v26 = vpop.f32.mrf.mxu2 }
 0x21b   :  { %v4741_v45 = vadd.f32 %v1544_v26, %v1455_v22 }
 0x21c   :  { %3164 = vmatmul.msk.bf16.vlgmr.msra.gmra.mxu1 %vm901_vm3, %v1589_v57  ;;  %2012 = vmatmul.bf16.vlgmr.msra.gmra.mxu3 %v3215_v25  ;;  %v3230_v25 = vld [vmem:[%s5389_s1 + $0x320] sm:$0xf] }
 0x21f   :  { %v1146_v1 = vpop.f32.mrf.mxu3 }
 0x220   :  { %v4743_v49 = vadd.f32 %v1146_v1, %v1006_v16  ;;  %v3474_v16 = vld [vmem:[%s5389_s1 + $0x324] sm:$0xf0] }
 0x221   :  { %v1008_v52 = vpop.f32.mrf.mxu1  ;;  %v1460_v57 = vpop.f32.mrf.mxu0  ;;  %v3231_v1 = vor.u32 %v3474_v16, %v3230_v25  ;;  %v3475_v25 = vld [vmem:[%s5389_s1 + $0x334] sm:$0xf]  ;;  %v3240_v16 = vld [vmem:[%s5389_s1 + $0x338] sm:$0xf0] }
 0x222   :  { %v1546_v47 = vpop.f32.mrf.mxu2  ;;  %v3243_v30 = vor.u32 %v3475_v25, %v3240_v16 }
 0x223   :  { %v4745_v31 = vadd.f32 %v1546_v47, %v1457_v21 }
 0x224   :  { %3340 = vmatmul.msk.bf16.vlgmr.msra.gmra.mxu0 %vm236_vm2, %v3219_v15 }
 0x225   :  { %v1596_v48 = vpack.c.bf16 %v4745_v31, %v4741_v45 }
 0x227   :  { %v1148_v11 = vpop.f32.mrf.mxu3 }
 0x228   :  { %v4756_v13 = vadd.f32 %v1148_v11, %v1008_v52  ;;  %v3473_v52 = vld [vmem:[%s5389_s1 + $0x324] sm:$0xf] }
 0x229   :  { %v1011_v6 = vpop.f32.mrf.mxu1  ;;  %v1462_v43 = vpop.f32.mrf.mxu0 }
 0x22a   :  { %v1549_v12 = vpop.f32.mrf.mxu2 }
 0x22b   :  { %v4768_v4 = vadd.f32 %v1549_v12, %v1460_v57  ;;  %v3232_v57 = vld [vmem:[%s5389_s1 + $0x328] sm:$0xf0] }
 0x22c   :  { %3165 = vmatmul.msk.bf16.gmra.mxu1 %vm901_vm3, %v1590_v28  ;;  %2017 = vmatmul.bf16.gmra.mxu3 %v3223_v42  ;;  %v3235_v58 = vor.u32 %v3473_v52, %v3232_v57  ;;  %v3246_v57 = vld [vmem:[%s5389_s1 + $0x340] sm:$0xf] }
 0x22f   :  { %v1151_v9 = vpop.f32.mrf.mxu3 }
 0x230   :  { %v4770_v5 = vadd.f32 %v1151_v9, %v1011_v6 }
 0x231   :  { %v1013_v18 = vpop.f32.mrf.mxu1  ;;  %v1465_v28 = vpop.f32.mrf.mxu0 }
 0x232   :  { %v1551_v22 = vpop.f32.mrf.mxu2 }
 0x233   :  { %v4772_v61 = vadd.f32 %v1551_v22, %v1462_v43  ;;  %v3238_v43 = vld [vmem:[%s5389_s1 + $0x330] sm:$0xf] }
 0x234   :  { %3341 = vmatmul.msk.bf16.gmra.mxu0 %vm236_vm2, %v3227_v3  ;;  %v3239_v3 = vor.u32 %v3476_v51, %v3238_v43 }
 0x235   :  { %v1597_v26 = vpack.c.bf16 %v4772_v61, %v4768_v4 }
 0x237   :  { %v1153_v21 = vpop.f32.mrf.mxu3 }
 0x238   :  { %v4783_v33 = vadd.f32 %v1153_v21, %v1013_v18 }
 0x239   :  { %v1016_v47 = vpop.f32.mrf.mxu1  ;;  %v1467_v15 = vpop.f32.mrf.mxu0 }
 0x23a   :  { %v1554_v55 = vpop.f32.mrf.mxu2 }
 0x23b   :  { %v4795_v11 = vadd.f32 %v1554_v55, %v1465_v28 }
 0x23c   :  { %3166 = vmatmul.msk.bf16.gmra.mxu1 %vm901_vm3, %v1591_v17  ;;  %2022 = vmatmul.bf16.gmra.mxu3 %v3231_v1 }
 0x23f   :  { %v1156_v41 = vpop.f32.mrf.mxu3 }
 0x240   :  { %v4797_v12 = vadd.f32 %v1156_v41, %v1016_v47  ;;  %v3478_v41 = vld [vmem:[%s5389_s1 + $0x344] sm:$0xf0] }
 0x241   :  { %v1018_v37 = vpop.f32.mrf.mxu1  ;;  %v1470_v17 = vpop.f32.mrf.mxu0 }
 0x242   :  { %v1556_v44 = vpop.f32.mrf.mxu2 }
 0x243   :  { %v4799_v42 = vadd.f32 %v1556_v44, %v1467_v15 }
 0x244   :  { %3342 = vmatmul.msk.bf16.gmra.mxu0 %vm236_vm2, %v3235_v58 }
 0x245   :  { %v1598_v6 = vpack.c.bf16 %v4799_v42, %v4795_v11 }
 0x247   :  { %v1158_v27 = vpop.f32.mrf.mxu3 }
 0x248   :  { %v4810_v22 = vadd.f32 %v1158_v27, %v1018_v37  ;;  %v3477_v27 = vld [vmem:[%s5389_s1 + $0x344] sm:$0xf] }
 0x249   :  { %v1021_v18 = vpop.f32.mrf.mxu1  ;;  %v1472_v28 = vpop.f32.mrf.mxu0 }
 0x24a   :  { %v1559_v9 = vpop.f32.mrf.mxu2 }
 0x24b   :  { %v4822_v1 = vadd.f32 %v1559_v9, %v1470_v17  ;;  %v3247_v17 = vor.u32 %v3478_v41, %v3246_v57  ;;  %v3248_v9 = vld [vmem:[%s5389_s1 + $0x348] sm:$0xf0] }
 0x24c   :  { %3167 = vmatmul.msk.bf16.gmra.mxu1 %vm901_vm3, %v1592_v36  ;;  %2027 = vmatmul.bf16.gmra.mxu3 %v3239_v3  ;;  %v3251_v60 = vor.u32 %v3477_v27, %v3248_v9 }
 0x24f   :  { %v1161_v21 = vpop.f32.mrf.mxu3 }
 0x250   :  { %v4824_v47 = vadd.f32 %v1161_v21, %v1021_v18 }
 0x251   :  { %v1023_v23 = vpop.f32.mrf.mxu1  ;;  %v1475_v36 = vpop.f32.mrf.mxu0 }
 0x252   :  { %v1561_v55 = vpop.f32.mrf.mxu2 }
 0x253   :  { %v4826_v15 = vadd.f32 %v1561_v55, %v1472_v28  ;;  %v3254_v55 = vld [vmem:[%s5389_s1 + $0x350] sm:$0xf] }
 0x254   :  { %3343 = vmatmul.msk.bf16.gmra.mxu0 %vm236_vm2, %v3243_v30  ;;  %v3480_v30 = vld [vmem:[%s5389_s1 + $0x354] sm:$0xf0] }
 0x255   :  { %v1599_v52 = vpack.c.bf16 %v4826_v15, %v4822_v1  ;;  %v3255_v41 = vor.u32 %v3480_v30, %v3254_v55  ;;  %v3302_v1 = vld [vmem:[%s5389_s1 + $0x3b0] sm:$0xf]  ;;  %v3492_v15 = vld [vmem:[%s5389_s1 + $0x3b4] sm:$0xf0] }
 0x257   :  { %v1163_v44 = vpop.f32.mrf.mxu3 }
 0x258   :  { %v4837_v37 = vadd.f32 %v1163_v44, %v1023_v23 }
 0x259   :  { %v1026_v43 = vpop.f32.mrf.mxu1  ;;  %v1477_v51 = vpop.f32.mrf.mxu0 }
 0x25a   :  { %v1564_v58 = vpop.f32.mrf.mxu2 }
 0x25b   :  { %v4849_v28 = vadd.f32 %v1564_v58, %v1475_v36 }
 0x25c   :  { %3168 = vmatmul.msk.bf16.gmra.mxu1 %vm901_vm3, %v1593_v50  ;;  %2032 = vmatmul.bf16.gmra.mxu3 %v3247_v17  ;;  %v3479_v17 = vld [vmem:[%s5389_s1 + $0x354] sm:$0xf] }
 0x25f   :  { %v1166_v3 = vpop.f32.mrf.mxu3 }
 0x260   :  { %v4851_v25 = vadd.f32 %v1166_v3, %v1026_v43  ;;  %v3256_v43 = vld [vmem:[%s5389_s1 + $0x358] sm:$0xf0] }
 0x261   :  { %v1028_v0 = vpop.f32.mrf.mxu1  ;;  %v1480_v50 = vpop.f32.mrf.mxu0  ;;  %v3259_v7 = vor.u32 %v3479_v17, %v3256_v43  ;;  %v3264_v17 = vld [vmem:[%s5389_s1 + $0x368] sm:$0xf0] }
 0x262   :  { %v1566_v18 = vpop.f32.mrf.mxu2 }
 0x263   :  { %v4853_v16 = vadd.f32 %v1566_v18, %v1477_v51 }
 0x264   :  { %3344 = vmatmul.msk.bf16.gmra.mxu0 %vm236_vm2, %v3251_v60 }
 0x265   :  { %v1600_v21 = vpack.c.bf16 %v4853_v16, %v4849_v28 }
 0x267   :  { %v1168_v23 = vpop.f32.mrf.mxu3 }
 0x268   :  { %v4864_v57 = vadd.f32 %v1168_v23, %v1028_v0  ;;  %v3262_v0 = vld [vmem:[%s5389_s1 + $0x360] sm:$0xf] }
 0x269   :  { %v1031_v44 = vpop.f32.mrf.mxu1  ;;  %v1482_v58 = vpop.f32.mrf.mxu0 }
 0x26a   :  { %v1569_v36 = vpop.f32.mrf.mxu2 }
 0x26b   :  { %v4876_v9 = vadd.f32 %v1569_v36, %v1480_v50  ;;  %v3482_v50 = vld [vmem:[%s5389_s1 + $0x364] sm:$0xf0] }
 0x26c   :  { %3169 = vmatmul.msk.bf16.gmra.mxu1 %vm901_vm3, %v1594_v54  ;;  %2037 = vmatmul.bf16.gmra.mxu3 %v3255_v41  ;;  %v3263_v36 = vor.u32 %v3482_v50, %v3262_v0  ;;  %v3270_v50 = vld [vmem:[%s5389_s1 + $0x370] sm:$0xf] }
 0x26f   :  { %v1171_v51 = vpop.f32.mrf.mxu3 }
 0x270   :  { %v4878_v3 = vadd.f32 %v1171_v51, %v1031_v44 }
 0x271   :  { %v1033_v53 = vpop.f32.mrf.mxu1  ;;  %v1485_v54 = vpop.f32.mrf.mxu0 }
 0x272   :  { %v1571_v27 = vpop.f32.mrf.mxu2 }
 0x273   :  { %v4880_v18 = vadd.f32 %v1571_v27, %v1482_v58  ;;  %v3481_v58 = vld [vmem:[%s5389_s1 + $0x364] sm:$0xf] }
 0x274   :  { %3345 = vmatmul.msk.bf16.gmra.mxu0 %vm236_vm2, %v3259_v7  ;;  %v3267_v20 = vor.u32 %v3481_v58, %v3264_v17  ;;  %v3483_v17 = vld [vmem:[%s5389_s1 + $0x374] sm:$0xf] }
 0x275   :  { %v1601_v60 = vpack.c.bf16 %v4880_v18, %v4876_v9  ;;  %v3318_v18 = vld [vmem:[%s5389_s1 + $0x3d0] sm:$0xf] }
 0x277   :  { %v1173_v55 = vpop.f32.mrf.mxu3 }
 0x278   :  { %v4891_v23 = vadd.f32 %v1173_v55, %v1033_v53 }
 0x279   :  { %v1036_v41 = vpop.f32.mrf.mxu1  ;;  %v1487_v44 = vpop.f32.mrf.mxu0 }
 0x27a   :  { %v1574_v30 = vpop.f32.mrf.mxu2 }
 0x27b   :  { %v4903_v27 = vadd.f32 %v1574_v30, %v1485_v54  ;;  %v3484_v54 = vld [vmem:[%s5389_s1 + $0x374] sm:$0xf0] }
 0x27c   :  { %3170 = vmatmul.msk.bf16.gmra.mxu1 %vm901_vm3, %v1595_v46  ;;  %2042 = vmatmul.bf16.gmra.mxu3 %v3263_v36 }
 0x27f   :  { %v1176_v43 = vpop.f32.mrf.mxu3 }
 0x280   :  { %v4905_v7 = vadd.f32 %v1176_v43, %v1036_v41  ;;  %v3271_v41 = vor.u32 %v3484_v54, %v3270_v50  ;;  %v3272_v43 = vld [vmem:[%s5389_s1 + $0x378] sm:$0xf0] }
 0x281   :  { %v1038_v56 = vpop.f32.mrf.mxu1  ;;  %v1490_v46 = vpop.f32.mrf.mxu0  ;;  %v3275_v45 = vor.u32 %v3483_v17, %v3272_v43 }
 0x282   :  { %v1576_v51 = vpop.f32.mrf.mxu2 }
 0x283   :  { %v4907_v53 = vadd.f32 %v1576_v51, %v1487_v44 }
 0x284   :  { %3346 = vmatmul.msk.bf16.gmra.mxu0 %vm236_vm2, %v3267_v20 }
 0x287   :  { %v1178_v55 = vpop.f32.mrf.mxu3 }
 0x288   :  { %v4918_v36 = vadd.f32 %v1178_v55, %v1038_v56  ;;  %v3487_v55 = vld [vmem:[%s5389_s1 + $0x394] sm:$0xf] }
 0x289   :  { %v1041_v44 = vpop.f32.mrf.mxu1  ;;  %v1492_v58 = vpop.f32.mrf.mxu0 }
 0x28a   :  { %v1579_v30 = vpop.f32.mrf.mxu2 }
 0x28b   :  { %v4930_v56 = vadd.f32 %v1579_v30, %v1490_v46  ;;  %v3486_v46 = vld [vmem:[%s5389_s1 + $0x384] sm:$0xf0] }
 0x28c   :  { %3171 = vmatmul.msk.bf16.gmra.mxu1 %vm901_vm3, %v1596_v48  ;;  %2047 = vmatmul.bf16.gmra.mxu3 %v3271_v41  ;;  %v3278_v41 = vld [vmem:[%s5389_s1 + $0x380] sm:$0xf] }
 0x28d   :  { %v3279_v17 = vor.u32 %v3486_v46, %v3278_v41 }
 0x28f   :  { %v1181_v51 = vpop.f32.mrf.mxu3 }
 0x290   :  { %v4932_v50 = vadd.f32 %v1181_v51, %v1041_v44 }
 0x291   :  { %v1043_v31 = vpop.f32.mrf.mxu1  ;;  %v1495_v48 = vpop.f32.mrf.mxu0 }
 0x292   :  { %v1581_v20 = vpop.f32.mrf.mxu2 }
 0x293   :  { %v4934_v54 = vadd.f32 %v1581_v20, %v1492_v58 }
 0x294   :  { %3347 = vmatmul.msk.bf16.gmra.mxu0 %vm236_vm2, %v3275_v45  ;;  %v3485_v45 = vld [vmem:[%s5389_s1 + $0x384] sm:$0xf] }
 0x297   :  { %v1183_v30 = vpop.f32.mrf.mxu3 }
 0x298   :  { %v4945_v58 = vadd.f32 %v1183_v30, %v1043_v31  ;;  %v3280_v31 = vld [vmem:[%s5389_s1 + $0x388] sm:$0xf0] }
 0x299   :  { %v1497_v43 = vpop.f32.mrf.mxu0  ;;  %v1667_v51 = vpop.f32.mrf.mxu1  ;;  %v3283_v61 = vor.u32 %v3485_v45, %v3280_v31  ;;  %v2373_v45 = vld [vmem:[%s5390_s3 + $0x8] sm:$0xff] }
 0x29a   :  { %v1584_v44 = vpop.f32.mrf.mxu2  ;;  %v4948_v20 = vadd.f32 %v1667_v51, %v4501_v63  ;;  %v2372_v63 = vld [vmem:[%s5390_s3] sm:$0xff] }
 0x29b   :  { %v4963_v30 = vadd.f32 %v1584_v44, %v1495_v48  ;;  %v3286_v48 = vld [vmem:[%s5389_s1 + $0x390] sm:$0xf]  ;;  %v3488_v44 = vld [vmem:[%s5389_s1 + $0x394] sm:$0xf0] }
 0x29c   :  { %3172 = vmatmul.msk.bf16.gmra.mxu1 %vm901_vm3, %v1597_v26  ;;  %2052 = vmatmul.bf16.gmra.mxu3 %v3279_v17  ;;  %v3507_v26 = vmov 0   ;;  %v3287_v31 = vor.u32 %v3488_v44, %v3286_v48  ;;  %v3288_v48 = vld [vmem:[%s5389_s1 + $0x398] sm:$0xf0]  ;;  %v3294_v44 = vld [vmem:[%s5389_s1 + $0x3a0] sm:$0xf] }
 0x29d   :  { %3503 = vset.pattern.permute.xlu0 %v3507_v26  ;;  %3504 = vset.pattern.permute.xlu1 %v3507_v26 }
 0x29e   :  { %2406 = vperm.xlu0 %3503, %v2372_v63   ;;  %3505 = vset.pattern.permute.xlu2 %v3507_v26 }
 0x29f   :  { %v2013_v46 = vpop.f32.mrf.mxu3 }
 0x2a1   :  { %v1669_v17 = vpop.f32.mrf.mxu1  ;;  %v2102_v51 = vpop.f32.mrf.mxu0 }
 0x2a2   :  { %v1586_v41 = vpop.f32.mrf.mxu2  ;;  %v4970_v0 = vadd.f32 %v1669_v17, %v4506_v14  ;;  %v2103_v14 = vadd.f32 %v2102_v51, %v2013_v46  ;;  %v2374_v46 = vld [vmem:[%s5390_s3 + $0x10] sm:$0xff]  ;;  %v3291_v51 = vor.u32 %v3487_v55, %v3288_v48  ;;  %v2375_v55 = vld [vmem:[%s5390_s3 + $0x18] sm:$0xff]  ;;  %v3489_v48 = vld [vmem:[%s5389_s1 + $0x3a4] sm:$0xf] }
 0x2a3   :  { %v4965_v4 = vadd.f32 %v1586_v41, %v1497_v43  ;;  %2416 = vperm.xlu1 %3504, %v2374_v46   ;;  %v3296_v46 = vld [vmem:[%s5389_s1 + $0x3a8] sm:$0xf0] }
 0x2a4   :  { %3348 = vmatmul.msk.bf16.gmra.mxu0 %vm236_vm2, %v3283_v61 }
 0x2a6   :  { %2411 = vperm.xlu0 %3503, %v2373_v45  }
 0x2a7   :  { %v2015_v43 = vpop.f32.mrf.mxu3 }
 0x2a9   :  { %v1672_v41 = vpop.f32.mrf.mxu1  ;;  %v2104_v63 = vpop.f32.mrf.mxu0 }
 0x2aa   :  { %v4983_v61 = vadd.f32 %v1672_v41, %v4530_v59  ;;  %v2105_v26 = vadd.f32 %v2104_v63, %v2015_v43  ;;  %v3490_v43 = vld [vmem:[%s5389_s1 + $0x3a4] sm:$0xf0] }
 0x2ab   :  { %2421 = vperm.xlu1 %3504, %v2375_v55  }
 0x2ac   :  { %v2182_v17 = vpack.c.bf16 %v2105_v26, %v2103_v14  ;;  %3173 = vmatmul.msk.bf16.gmra.mxu1 %vm901_vm3, %v1598_v6  ;;  %2057 = vmatmul.bf16.gmra.mxu3 %v3287_v31  ;;  %v3295_v31 = vor.u32 %v3490_v43, %v3294_v44  ;;  %v3303_v44 = vor.u32 %v3492_v15, %v3302_v1 }
 0x2ae   :  { %3357 = vmatmul.msk.bf16.vlgmr.msra.gmra.mxu2 %vm901_vm3, %v2182_v17 }
 0x2af   :  { %v2018_v59 = vpop.f32.mrf.mxu3 }
 0x2b1   :  { %v1674_v11 = vpop.f32.mrf.mxu1  ;;  %v2107_v42 = vpop.f32.mrf.mxu0 }
 0x2b2   :  { %v5000_v6 = vadd.f32 %v1674_v11, %v4537_v10  ;;  %v2108_v63 = vadd.f32 %v2107_v42, %v2018_v59  ;;  %v3299_v59 = vor.u32 %v3489_v48, %v3296_v46  ;;  %v3310_v48 = vld [vmem:[%s5389_s1 + $0x3c0] sm:$0xf]  ;;  %v3494_v46 = vld [vmem:[%s5389_s1 + $0x3c4] sm:$0xf0] }
 0x2b4   :  { %3349 = vmatmul.msk.bf16.gmra.mxu0 %vm236_vm2, %v3291_v51 }
 0x2b7   :  { %v2020_v45 = vpop.f32.mrf.mxu3 }
 0x2b9   :  { %v1677_v41 = vpop.f32.mrf.mxu1  ;;  %v2109_v10 = vpop.f32.mrf.mxu0 }
 0x2ba   :  { %v5013_v14 = vadd.f32 %v1677_v41, %v4561_v38  ;;  %v2110_v26 = vadd.f32 %v2109_v10, %v2020_v45  ;;  %v3491_v10 = vld [vmem:[%s5389_s1 + $0x3b4] sm:$0xf] }
 0x2bc   :  { %v2183_v17 = vpack.c.bf16 %v2110_v26, %v2108_v63  ;;  %3174 = vmatmul.msk.bf16.gmra.mxu1 %vm901_vm3, %v1599_v52  ;;  %2062 = vmatmul.bf16.gmra.mxu3 %v3295_v31  ;;  %v3304_v63 = vld [vmem:[%s5389_s1 + $0x3b8] sm:$0xf0]  ;;  %v2378_v26 = vld [vmem:[%s5390_s3 + $0x30] sm:$0xff] }
 0x2bd   :  { %2436 = vperm.xlu0 %3503, %v2378_v26  }
 0x2be   :  { %3358 = vmatmul.msk.bf16.gmra.mxu2 %vm901_vm3, %v2183_v17  ;;  %v3307_v17 = vor.u32 %v3491_v10, %v3304_v63  ;;  %v2381_v10 = vld [vmem:[%s5390_s3 + $0x48] sm:$0xff] }
 0x2bf   :  { %v2023_v38 = vpop.f32.mrf.mxu3 }
 0x2c1   :  { %v1679_v51 = vpop.f32.mrf.mxu1  ;;  %v2112_v11 = vpop.f32.mrf.mxu0 }
 0x2c2   :  { %v5027_v42 = vadd.f32 %v1679_v51, %v4568_v35  ;;  %v2113_v55 = vadd.f32 %v2112_v11, %v2023_v38  ;;  %v3311_v51 = vor.u32 %v3494_v46, %v3310_v48  ;;  %v3495_v48 = vld [vmem:[%s5389_s1 + $0x3d4] sm:$0xf]  ;;  %v3320_v46 = vld [vmem:[%s5389_s1 + $0x3d8] sm:$0xf0] }
 0x2c4   :  { %3350 = vmatmul.msk.bf16.gmra.mxu0 %vm236_vm2, %v3299_v59  ;;  %v2376_v59 = vld [vmem:[%s5390_s3 + $0x20] sm:$0xff] }
 0x2c5   :  { %2426 = vperm.xlu2 %3505, %v2376_v59   ;;  %2451 = vperm.xlu0 %3503, %v2381_v10   ;;  %v2382_v59 = vld [vmem:[%s5390_s3 + $0x50] sm:$0xff]  ;;  %v3500_v10 = vld [vmem:[%s5389_s1 + $0x3f4] sm:$0xf0] }
 0x2c7   :  { %v2025_v52 = vpop.f32.mrf.mxu3 }
 0x2c9   :  { %v1682_v43 = vpop.f32.mrf.mxu1  ;;  %v2114_v45 = vpop.f32.mrf.mxu0 }
 0x2ca   :  { %v5037_v31 = vadd.f32 %v1682_v43, %v4592_v8  ;;  %v2115_v35 = vadd.f32 %v2114_v45, %v2025_v52  ;;  %v3312_v43 = vld [vmem:[%s5389_s1 + $0x3c8] sm:$0xf0] }
 0x2cc   :  { %v2184_v41 = vpack.c.bf16 %v2115_v35, %v2113_v55  ;;  %3175 = vmatmul.msk.bf16.gmra.mxu1 %vm901_vm3, %v1600_v21  ;;  %2067 = vmatmul.bf16.gmra.mxu3 %v3303_v44  ;;  %v3493_v44 = vld [vmem:[%s5389_s1 + $0x3c4] sm:$0xf]  ;;  %v2377_v55 = vld [vmem:[%s5390_s3 + $0x28] sm:$0xff] }
 0x2cd   :  { %v3315_v35 = vor.u32 %v3493_v44, %v3312_v43  ;;  %2431 = vperm.xlu2 %3505, %v2377_v55   ;;  %v5393_v55 = vpack.c.bf16 %v4934_v54, %v4930_v56  ;;  %v3334_v54 = vld [vmem:[%s5389_s1 + $0x3f0] sm:$0xf] }
 0x2ce   :  { %3359 = vmatmul.msk.bf16.gmra.mxu2 %vm901_vm3, %v2184_v41 }
 0x2cf   :  { %v2028_v8 = vpop.f32.mrf.mxu3 }
 0x2d1   :  { %v1684_v28 = vpop.f32.mrf.mxu1  ;;  %v2117_v16 = vpop.f32.mrf.mxu0 }
 0x2d2   :  { %v5054_v21 = vadd.f32 %v1684_v28, %v4599_v32  ;;  %v2379_v32 = vld [vmem:[%s5390_s3 + $0x38] sm:$0xff]  ;;  %v2118_v1 = vadd.f32 %v2117_v16, %v2028_v8  ;;  %v5392_v16 = vpack.c.bf16 %v4907_v53, %v4903_v27  ;;  %v3326_v53 = vld [vmem:[%s5389_s1 + $0x3e0] sm:$0xf] }
 0x2d3   :  { %2441 = vperm.xlu1 %3504, %v2379_v32   ;;  %v3323_v32 = vor.u32 %v3495_v48, %v3320_v46  ;;  %v5394_v46 = vpack.c.bf16 %v4965_v4, %v4963_v30 }
 0x2d4   :  { %3351 = vmatmul.msk.bf16.gmra.mxu0 %vm236_vm2, %v3307_v17 }
 0x2d7   :  { %v2030_v38 = vpop.f32.mrf.mxu3 }
 0x2d9   :  { %v2119_v11 = vpop.f32.mrf.mxu0 }
 0x2da   :  { %v2120_v15 = vadd.f32 %v2119_v11, %v2030_v38 }
 0x2db   :  { %2456 = vperm.xlu1 %3504, %v2382_v59   ;;  %v3336_v59 = vld [vmem:[%s5389_s1 + $0x3f8] sm:$0xf0] }
 0x2dc   :  { %v2185_v52 = vpack.c.bf16 %v2120_v15, %v2118_v1  ;;  %3176 = vmatmul.msk.bf16.gmra.mxu1 %vm901_vm3, %v1601_v60  ;;  %2072 = vmatmul.bf16.gmra.mxu3 %v3311_v51  ;;  %v3496_v60 = vld [vmem:[%s5389_s1 + $0x3d4] sm:$0xf0]  ;;  %v3498_v51 = vld [vmem:[%s5389_s1 + $0x3e4] sm:$0xf0]  ;;  %v2380_v1 = vld [vmem:[%s5390_s3 + $0x40] sm:$0xff] }
 0x2dd   :  { %v3319_v63 = vor.u32 %v3496_v60, %v3318_v18  ;;  %v3327_v15 = vor.u32 %v3498_v51, %v3326_v53  ;;  %2446 = vperm.xlu2 %3505, %v2380_v1   ;;  %v2384_v60 = vld [vmem:[%s5390_s3 + $0x60] sm:$0xff]  ;;  %v2387_v51 = vld [vmem:[%s5390_s3 + $0x78] sm:$0xff] }
 0x2de   :  { %3360 = vmatmul.msk.bf16.gmra.mxu2 %vm901_vm3, %v2185_v52  ;;  %2466 = vperm.xlu0 %3503, %v2384_v60  }
 0x2df   :  { %v2033_v45 = vpop.f32.mrf.mxu3 }
 0x2e1   :  { %v2122_v9 = vpop.f32.mrf.mxu0 }
 0x2e2   :  { %v2123_v26 = vadd.f32 %v2122_v9, %v2033_v45  ;;  %v3328_v9 = vld [vmem:[%s5389_s1 + $0x3e8] sm:$0xf0] }
 0x2e4   :  { %3352 = vmatmul.msk.bf16.gmra.mxu0 %vm236_vm2, %v3315_v35  ;;  %v3497_v35 = vld [vmem:[%s5389_s1 + $0x3e4] sm:$0xf] }
 0x2e6   :  { %2481 = vperm.xlu0 %3503, %v2387_v51  }
 0x2e7   :  { %v2035_v41 = vpop.f32.mrf.mxu3 }
 0x2e9   :  { %v2124_v8 = vpop.f32.mrf.mxu0 }
 0x2ea   :  { %v2125_v17 = vadd.f32 %v2124_v8, %v2035_v41  ;;  %v3331_v41 = vor.u32 %v3497_v35, %v3328_v9  ;;  %v2385_v8 = vld [vmem:[%s5390_s3 + $0x68] sm:$0xff]  ;;  %v2386_v35 = vld [vmem:[%s5390_s3 + $0x70] sm:$0xff]  ;;  %v2391_v9 = vld [vmem:[%s5390_s3 + $0x98] sm:$0xff] }
 0x2eb   :  { %2471 = vperm.xlu1 %3504, %v2385_v8   ;;  %v2393_v8 = vld [vmem:[%s5390_s3 + $0xa8] sm:$0xff] }
 0x2ec   :  { %v2186_v28 = vpack.c.bf16 %v2125_v17, %v2123_v26  ;;  %3177 = vmatmul.msk.bf16.gmra.mxu1 %vm901_vm3, %v5392_v16  ;;  %2077 = vmatmul.bf16.gmra.mxu3 %v3319_v63  ;;  %v3335_v26 = vor.u32 %v3500_v10, %v3334_v54 }
 0x2ee   :  { %3361 = vmatmul.msk.bf16.gmra.mxu2 %vm901_vm3, %v2186_v28 }
 0x2ef   :  { %v2038_v38 = vpop.f32.mrf.mxu3 }
 0x2f1   :  { %v2127_v27 = vpop.f32.mrf.mxu0 }
 0x2f2   :  { %v2128_v44 = vadd.f32 %v2127_v27, %v2038_v38  ;;  %v3499_v38 = vld [vmem:[%s5389_s1 + $0x3f4] sm:$0xf]  ;;  %v2383_v27 = vld [vmem:[%s5390_s3 + $0x58] sm:$0xff] }
 0x2f3   :  { %v3339_v53 = vor.u32 %v3499_v38, %v3336_v59  ;;  %2461 = vperm.xlu2 %3505, %v2383_v27   ;;  %v2397_v38 = vld [vmem:[%s5390_s3 + $0xc8] sm:$0xff]  ;;  %v2396_v59 = vld [vmem:[%s5390_s3 + $0xc0] sm:$0xff] }
 0x2f4   :  { %3353 = vmatmul.msk.bf16.gmra.mxu0 %vm236_vm2, %v3323_v32 }
 0x2f7   :  { %v2040_v11 = vpop.f32.mrf.mxu3 }
 0x2f9   :  { %v2129_v52 = vpop.f32.mrf.mxu0 }
 0x2fa   :  { %v2130_v43 = vadd.f32 %v2129_v52, %v2040_v11 }
 0x2fb   :  { %2476 = vperm.xlu2 %3505, %v2386_v35  }
 0x2fc   :  { %v2187_v45 = vpack.c.bf16 %v2130_v43, %v2128_v44  ;;  %3178 = vmatmul.msk.bf16.gmra.mxu1 %vm901_vm3, %v5393_v55  ;;  %2082 = vmatmul.bf16.gmra.mxu3 %v3327_v15  ;;  %v2388_v43 = vld [vmem:[%s5390_s3 + $0x80] sm:$0xff] }
 0x2fd   :  { %2486 = vperm.xlu1 %3504, %v2388_v43  }
 0x2fe   :  { %3362 = vmatmul.msk.bf16.gmra.mxu2 %vm901_vm3, %v2187_v45 }
 0x2ff   :  { %v2043_v18 = vpop.f32.mrf.mxu3 }
 0x301   :  { %v2132_v56 = vpop.f32.mrf.mxu0 }
 0x302   :  { %v2133_v28 = vadd.f32 %v2132_v56, %v2043_v18  ;;  %v2390_v18 = vld [vmem:[%s5390_s3 + $0x90] sm:$0xff] }
 0x303   :  { %2496 = vperm.xlu0 %3503, %v2390_v18  }
 0x304   :  { %3354 = vmatmul.msk.bf16.gmra.mxu0 %vm236_vm2, %v3331_v41 }
 0x305   :  { %2501 = vperm.xlu1 %3504, %v2391_v9  }
 0x307   :  { %v2045_v63 = vpop.f32.mrf.mxu3 }
 0x309   :  { %v2134_v17 = vpop.f32.mrf.mxu0 }
 0x30a   :  { %v2135_v16 = vadd.f32 %v2134_v17, %v2045_v63  ;;  %v2394_v63 = vld [vmem:[%s5390_s3 + $0xb0] sm:$0xff] }
 0x30b   :  { %2511 = vperm.xlu0 %3503, %v2393_v8  }
 0x30c   :  { %v2188_v48 = vpack.c.bf16 %v2135_v16, %v2133_v28  ;;  %3179 = vmatmul.msk.bf16.gmra.mxu1 %vm901_vm3, %v5394_v46  ;;  %2087 = vmatmul.bf16.gmra.mxu3 %v3335_v26 }
 0x30d   :  { %2516 = vperm.xlu1 %3504, %v2394_v63  }
 0x30e   :  { %3363 = vmatmul.msk.bf16.gmra.mxu2 %vm901_vm3, %v2188_v48 }
 0x30f   :  { %v2048_v32 = vpop.f32.mrf.mxu3 }
 0x310   :  { %v2407_v26 = vpop.permute.xlu0 %2406 }
 0x311   :  { %v2137_v30 = vpop.f32.mrf.mxu0 }
 0x312   :  { %v2138_v1 = vadd.f32 %v2137_v30, %v2048_v32 }
 0x313   :  { %2526 = vperm.xlu0 %3503, %v2396_v59  }
 0x314   :  { %3355 = vmatmul.msk.bf16.gmra.mxu0 %vm236_vm2, %v3339_v53 }
 0x315   :  { %2531 = vperm.xlu1 %3504, %v2397_v38   ;;  %v2417_v43 = vpop.permute.xlu1 %2416 }
 0x317   :  { %v2050_v4 = vpop.f32.mrf.mxu3 }
 0x318   :  { %v2412_v30 = vpop.permute.xlu0 %2411 }
 0x319   :  { %v2139_v11 = vpop.f32.mrf.mxu0 }
 0x31a   :  { %v2140_v15 = vadd.f32 %v2139_v11, %v2050_v4  ;;  %v5191_v11 = vpop.f32.mrf.mxu1 }
 0x31c   :  { %v2189_v52 = vpack.c.bf16 %v2140_v15, %v2138_v1 }
 0x31d   :  { %v2422_v8 = vpop.permute.xlu1 %2421 }
 0x31e   :  { %3364 = vmatmul.msk.bf16.gmra.mxu2 %vm901_vm3, %v2189_v52  ;;  %v2389_v52 = vld [vmem:[%s5390_s3 + $0x88] sm:$0xff] }
 0x31f   :  { %v2053_v44 = vpop.f32.mrf.mxu3  ;;  %2491 = vperm.xlu2 %3505, %v2389_v52  }
 0x321   :  { %v2142_v45 = vpop.f32.mrf.mxu0 }
 0x322   :  { %v2143_v41 = vadd.f32 %v2142_v45, %v2053_v44  ;;  %v2399_v44 = vld [vmem:[%s5390_s3 + $0xd8] sm:$0xff]  ;;  %v5208_v18 = vpop.f32.mrf.mxu1 }
 0x323   :  { %2541 = vperm.xlu0 %3503, %v2399_v44  }
 0x327   :  { %v2055_v55 = vpop.f32.mrf.mxu3 }
 0x329   :  { %v2144_v60 = vpop.f32.mrf.mxu0 }
 0x32a   :  { %v2145_v56 = vadd.f32 %v2144_v60, %v2055_v55  ;;  %v5229_v38 = vpop.f32.mrf.mxu1 }
 0x32c   :  { %v2190_v54 = vpack.c.bf16 %v2145_v56, %v2143_v41  ;;  %v2403_v41 = vld [vmem:[%s5390_s3 + $0xf8] sm:$0xff]  ;;  %v2402_v56 = vld [vmem:[%s5390_s3 + $0xf0] sm:$0xff] }
 0x32d   :  { %2556 = vperm.xlu0 %3503, %v2402_v56  }
 0x32e   :  { %3365 = vmatmul.msk.bf16.gmra.mxu2 %vm901_vm3, %v2190_v54 }
 0x32f   :  { %v2058_v10 = vpop.f32.mrf.mxu3 }
 0x331   :  { %v2147_v17 = vpop.f32.mrf.mxu0  ;;  %v2260_v28 = vpop.f32.mrf.mxu2 }
 0x332   :  { %v2340_v16 = vadd.f32 %v2260_v28, %v4948_v20  ;;  %v2148_v20 = vadd.f32 %v2147_v17, %v2058_v10  ;;  %v1694_v52 = vpop.f32.mrf.mxu1 }
 0x334   :  { %v2564_v48 = vadd.f32 %v2407_v26, %v2340_v16 }
 0x336   :  { %2597 = vst.msk [vmem:[%s5391_s4] sm:$0xff] %vm2596_vm4, %v2564_v48  ;;  %v2392_v48 = vld [vmem:[%s5390_s3 + $0xa0] sm:$0xff] }
 0x337   :  { %v2060_v46 = vpop.f32.mrf.mxu3  ;;  %2506 = vperm.xlu2 %3505, %v2392_v48  }
 0x339   :  { %v2149_v32 = vpop.f32.mrf.mxu0  ;;  %v2262_v53 = vpop.f32.mrf.mxu2 }
 0x33a   :  { %v2150_v27 = vadd.f32 %v2149_v32, %v2060_v46  ;;  %v2341_v4 = vadd.f32 %v2262_v53, %v4970_v0  ;;  %v2400_v0 = vld [vmem:[%s5390_s3 + $0xe0] sm:$0xff]  ;;  %v2427_v46 = vpop.permute.xlu2 %2426  ;;  %v2395_v53 = vld [vmem:[%s5390_s3 + $0xb8] sm:$0xff] }
 0x33b   :  { %2546 = vperm.xlu1 %3504, %v2400_v0  }
 0x33c   :  { %v2191_v51 = vpack.c.bf16 %v2150_v27, %v2148_v20  ;;  %v2565_v1 = vadd.f32 %v2412_v30, %v2341_v4 }
 0x33e   :  { %3366 = vmatmul.msk.bf16.gmra.mxu2 %vm901_vm3, %v2191_v51  ;;  %2598 = vst.msk [vmem:[%s5391_s4 + $0x8] sm:$0xff] %vm2596_vm4, %v2565_v1 }
 0x33f   :  { %v2063_v15 = vpop.f32.mrf.mxu3  ;;  %2521 = vperm.xlu2 %3505, %v2395_v53   ;;  %v1756_v53 = vadd.f32 %v5208_v18, %v4630_v34  ;;  %v1757_v34 = vadd.f32 %v5229_v38, %v4654_v39 }
 0x341   :  { %v2152_v45 = vpop.f32.mrf.mxu0  ;;  %v2265_v55 = vpop.f32.mrf.mxu2 }
 0x342   :  { %v2342_v35 = vadd.f32 %v2265_v55, %v4983_v61  ;;  %v2153_v61 = vadd.f32 %v2152_v45, %v2063_v15  ;;  %v2432_v15 = vpop.permute.xlu2 %2431  ;;  %v2398_v45 = vld [vmem:[%s5390_s3 + $0xd0] sm:$0xff] }
 0x343   :  { %2561 = vperm.xlu1 %3504, %v2403_v41  }
 0x344   :  { %v2566_v9 = vadd.f32 %v2417_v43, %v2342_v35 }
 0x346   :  { %2599 = vst.msk [vmem:[%s5391_s4 + $0x10] sm:$0xff] %vm2596_vm4, %v2566_v9  ;;  %v2437_v9 = vpop.permute.xlu0 %2436 }
 0x347   :  { %v2065_v60 = vpop.f32.mrf.mxu3  ;;  %2536 = vperm.xlu2 %3505, %v2398_v45  }
 0x349   :  { %v2154_v54 = vpop.f32.mrf.mxu0  ;;  %v2267_v63 = vpop.f32.mrf.mxu2 }
 0x34a   :  { %v2155_v10 = vadd.f32 %v2154_v54, %v2065_v60  ;;  %v2343_v26 = vadd.f32 %v2267_v63, %v5000_v6  ;;  %v1697_v60 = vpop.f32.mrf.mxu1  ;;  %v2401_v54 = vld [vmem:[%s5390_s3 + $0xe8] sm:$0xff] }
 0x34c   :  { %v2192_v17 = vpack.c.bf16 %v2155_v10, %v2153_v61  ;;  %v2567_v28 = vadd.f32 %v2422_v8, %v2343_v26  ;;  %v2442_v26 = vpop.permute.xlu1 %2441 }
 0x34e   :  { %3367 = vmatmul.msk.bf16.gmra.mxu2 %vm901_vm3, %v2192_v17  ;;  %2600 = vst.msk [vmem:[%s5391_s4 + $0x18] sm:$0xff] %vm2596_vm4, %v2567_v28 }
 0x34f   :  { %v2068_v16 = vpop.f32.mrf.mxu3  ;;  %2551 = vperm.xlu2 %3505, %v2401_v54  }
 0x351   :  { %v2157_v59 = vpop.f32.mrf.mxu0  ;;  %v2270_v6 = vpop.f32.mrf.mxu2 }
 0x352   :  { %v2344_v32 = vadd.f32 %v2270_v6, %v5013_v14  ;;  %v2158_v4 = vadd.f32 %v2157_v59, %v2068_v16  ;;  %v1699_v16 = vpop.f32.mrf.mxu1 }
 0x354   :  { %v2568_v20 = vadd.f32 %v2427_v46, %v2344_v32  ;;  %v1755_v46 = vadd.f32 %v5191_v11, %v4623_v2  ;;  %v2447_v32 = vpop.permute.xlu2 %2446  ;;  %v2452_v2 = vpop.permute.xlu0 %2451 }
 0x355   :  { %v2457_v45 = vpop.permute.xlu1 %2456 }
 0x356   :  { %2601 = vst.msk [vmem:[%s5391_s4 + $0x20] sm:$0xff] %vm2596_vm4, %v2568_v20 }
 0x357   :  { %v2070_v27 = vpop.f32.mrf.mxu3 }
 0x359   :  { %v2159_v30 = vpop.f32.mrf.mxu0  ;;  %v2272_v1 = vpop.f32.mrf.mxu2 }
 0x35a   :  { %v2160_v51 = vadd.f32 %v2159_v30, %v2070_v27  ;;  %v2345_v14 = vadd.f32 %v2272_v1, %v5027_v42  ;;  %v1702_v30 = vpop.f32.mrf.mxu1 }
 0x35c   :  { %v2193_v0 = vpack.c.bf16 %v2160_v51, %v2158_v4  ;;  %v2569_v44 = vadd.f32 %v2432_v15, %v2345_v14 }
 0x35e   :  { %3368 = vmatmul.msk.bf16.gmra.mxu2 %vm901_vm3, %v2193_v0  ;;  %2602 = vst.msk [vmem:[%s5391_s4 + $0x28] sm:$0xff] %vm2596_vm4, %v2569_v44 }
 0x35f   :  { %v2073_v43 = vpop.f32.mrf.mxu3 }
 0x361   :  { %v2162_v55 = vpop.f32.mrf.mxu0  ;;  %v2275_v35 = vpop.f32.mrf.mxu2 }
 0x362   :  { %v2346_v42 = vadd.f32 %v2275_v35, %v5037_v31  ;;  %v2163_v10 = vadd.f32 %v2162_v55, %v2073_v43  ;;  %v1704_v35 = vpop.f32.mrf.mxu1 }
 0x364   :  { %v2570_v41 = vadd.f32 %v2437_v9, %v2346_v42 }
 0x366   :  { %2603 = vst.msk [vmem:[%s5391_s4 + $0x30] sm:$0xff] %vm2596_vm4, %v2570_v41  ;;  %v1758_v41 = vadd.f32 %v1694_v52, %v4661_v19 }
 0x367   :  { %v2075_v56 = vpop.f32.mrf.mxu3 }
 0x369   :  { %v2164_v61 = vpop.f32.mrf.mxu0  ;;  %v2277_v8 = vpop.f32.mrf.mxu2 }
 0x36a   :  { %v2165_v63 = vadd.f32 %v2164_v61, %v2075_v56  ;;  %v2347_v31 = vadd.f32 %v2277_v8, %v5054_v21 }
 0x36c   :  { %v2194_v17 = vpack.c.bf16 %v2165_v63, %v2163_v10  ;;  %v2571_v28 = vadd.f32 %v2442_v26, %v2347_v31  ;;  %v2462_v63 = vpop.permute.xlu2 %2461  ;;  %v1707_v26 = vpop.f32.mrf.mxu1 }
 0x36e   :  { %3369 = vmatmul.msk.bf16.gmra.mxu2 %vm901_vm3, %v2194_v17  ;;  %2604 = vst.msk [vmem:[%s5391_s4 + $0x38] sm:$0xff] %vm2596_vm4, %v2571_v28  ;;  %v1759_v17 = vadd.f32 %v1697_v60, %v4685_v29  ;;  %v2467_v28 = vpop.permute.xlu0 %2466 }
 0x36f   :  { %v2078_v48 = vpop.f32.mrf.mxu3 }
 0x371   :  { %v2167_v59 = vpop.f32.mrf.mxu0  ;;  %v2280_v6 = vpop.f32.mrf.mxu2 }
 0x372   :  { %v2348_v20 = vadd.f32 %v2280_v6, %v1755_v46  ;;  %v2168_v51 = vadd.f32 %v2167_v59, %v2078_v48  ;;  %v1760_v6 = vadd.f32 %v1699_v16, %v4692_v40 }
 0x374   :  { %v2572_v27 = vadd.f32 %v2447_v32, %v2348_v20  ;;  %v1709_v59 = vpop.f32.mrf.mxu1  ;;  %v2477_v40 = vpop.permute.xlu2 %2476 }
 0x376   :  { %2605 = vst.msk [vmem:[%s5391_s4 + $0x40] sm:$0xff] %vm2596_vm4, %v2572_v27 }
 0x377   :  { %v2080_v21 = vpop.f32.mrf.mxu3 }
 0x379   :  { %v2169_v4 = vpop.f32.mrf.mxu0  ;;  %v2282_v15 = vpop.f32.mrf.mxu2 }
 0x37a   :  { %v2170_v1 = vadd.f32 %v2169_v4, %v2080_v21  ;;  %v2349_v11 = vadd.f32 %v2282_v15, %v1756_v53  ;;  %v2472_v4 = vpop.permute.xlu1 %2471 }
 0x37c   :  { %v2195_v14 = vpack.c.bf16 %v2170_v1, %v2168_v51  ;;  %v2573_v0 = vadd.f32 %v2452_v2, %v2349_v11  ;;  %v1761_v1 = vadd.f32 %v1702_v30, %v4716_v62  ;;  %v1712_v2 = vpop.f32.mrf.mxu1  ;;  %v1763_v62 = vadd.f32 %v1707_v26, %v4743_v49 }
 0x37d   :  { %v1765_v49 = vadd.f32 %v1712_v2, %v4770_v5 }
 0x37e   :  { %3370 = vmatmul.msk.bf16.gmra.mxu2 %vm901_vm3, %v2195_v14  ;;  %2606 = vst.msk [vmem:[%s5391_s4 + $0x48] sm:$0xff] %vm2596_vm4, %v2573_v0  ;;  %v1762_v14 = vadd.f32 %v1704_v35, %v4729_v24  ;;  %v1764_v35 = vadd.f32 %v1709_v59, %v4756_v13 }
 0x37f   :  { %v2083_v44 = vpop.f32.mrf.mxu3 }
 0x381   :  { %v2172_v18 = vpop.f32.mrf.mxu0  ;;  %v2285_v43 = vpop.f32.mrf.mxu2 }
 0x382   :  { %v2350_v55 = vadd.f32 %v2285_v43, %v1757_v34  ;;  %v2173_v54 = vadd.f32 %v2172_v18, %v2083_v44  ;;  %v2482_v44 = vpop.permute.xlu0 %2481 }
 0x384   :  { %v2574_v9 = vadd.f32 %v2457_v45, %v2350_v55  ;;  %v1714_v43 = vpop.f32.mrf.mxu1  ;;  %v2487_v45 = vpop.permute.xlu1 %2486 }
 0x385   :  { %v1766_v13 = vadd.f32 %v1714_v43, %v4783_v33 }
 0x386   :  { %2607 = vst.msk [vmem:[%s5391_s4 + $0x50] sm:$0xff] %vm2596_vm4, %v2574_v9 }
 0x387   :  { %v2085_v42 = vpop.f32.mrf.mxu3 }
 0x389   :  { %v2174_v56 = vpop.f32.mrf.mxu0  ;;  %v2287_v10 = vpop.f32.mrf.mxu2 }
 0x38a   :  { %v2175_v61 = vadd.f32 %v2174_v56, %v2085_v42  ;;  %v2351_v39 = vadd.f32 %v2287_v10, %v1758_v41  ;;  %v2492_v41 = vpop.permute.xlu2 %2491 }
 0x38c   :  { %v2196_v38 = vpack.c.bf16 %v2175_v61, %v2173_v54  ;;  %v2575_v8 = vadd.f32 %v2462_v63, %v2351_v39  ;;  %v1717_v24 = vpop.f32.mrf.mxu1  ;;  %v2497_v39 = vpop.permute.xlu0 %2496 }
 0x38d   :  { %v1767_v5 = vadd.f32 %v1717_v24, %v4797_v12 }
 0x38e   :  { %3371 = vmatmul.msk.bf16.gmra.mxu2 %vm901_vm3, %v2196_v38  ;;  %2608 = vst.msk [vmem:[%s5391_s4 + $0x58] sm:$0xff] %vm2596_vm4, %v2575_v8 }
 0x38f   :  { %v2088_v31 = vpop.f32.mrf.mxu3 }
 0x391   :  { %v2177_v19 = vpop.f32.mrf.mxu0  ;;  %v2290_v52 = vpop.f32.mrf.mxu2 }
 0x392   :  { %v2352_v48 = vadd.f32 %v2290_v52, %v1759_v17  ;;  %v2178_v27 = vadd.f32 %v2177_v19, %v2088_v31  ;;  %v2502_v17 = vpop.permute.xlu1 %2501 }
 0x394   :  { %v2576_v46 = vadd.f32 %v2467_v28, %v2352_v48  ;;  %v1719_v61 = vpop.f32.mrf.mxu1  ;;  %v2507_v48 = vpop.permute.xlu2 %2506 }
 0x395   :  { %v1768_v33 = vadd.f32 %v1719_v61, %v4810_v22 }
 0x396   :  { %2609 = vst.msk [vmem:[%s5391_s4 + $0x60] sm:$0xff] %vm2596_vm4, %v2576_v46 }
 0x397   :  { %v2090_v32 = vpop.f32.mrf.mxu3 }
 0x399   :  { %v2179_v20 = vpop.f32.mrf.mxu0  ;;  %v2292_v53 = vpop.f32.mrf.mxu2 }
 0x39a   :  { %v2180_v21 = vadd.f32 %v2179_v20, %v2090_v32  ;;  %v2353_v29 = vadd.f32 %v2292_v53, %v1760_v6  ;;  %v2512_v20 = vpop.permute.xlu0 %2511 }
 0x39c   :  { %v2197_v60 = vpack.c.bf16 %v2180_v21, %v2178_v27  ;;  %v2577_v51 = vadd.f32 %v2472_v4, %v2353_v29  ;;  %v1722_v31 = vpop.f32.mrf.mxu1  ;;  %v2517_v29 = vpop.permute.xlu1 %2516 }
 0x39d   :  { %v1769_v21 = vadd.f32 %v1722_v31, %v4824_v47 }
 0x39e   :  { %3372 = vmatmul.msk.bf16.gmra.mxu2 %vm901_vm3, %v2197_v60  ;;  %2610 = vst.msk [vmem:[%s5391_s4 + $0x68] sm:$0xff] %vm2596_vm4, %v2577_v51 }
 0x3a1   :  { %v2295_v15 = vpop.f32.mrf.mxu2 }
 0x3a2   :  { %v2354_v16 = vadd.f32 %v2295_v15, %v1761_v1 }
 0x3a4   :  { %v2578_v11 = vadd.f32 %v2477_v40, %v2354_v16  ;;  %v1724_v59 = vpop.f32.mrf.mxu1  ;;  %v2522_v40 = vpop.permute.xlu2 %2521 }
 0x3a5   :  { %v1770_v22 = vadd.f32 %v1724_v59, %v4837_v37  ;;  %v2532_v43 = vpop.permute.xlu1 %2531 }
 0x3a6   :  { %2611 = vst.msk [vmem:[%s5391_s4 + $0x70] sm:$0xff] %vm2596_vm4, %v2578_v11 }
 0x3a9   :  { %v2297_v0 = vpop.f32.mrf.mxu2 }
 0x3aa   :  { %v2355_v34 = vadd.f32 %v2297_v0, %v1762_v14  ;;  %v2527_v0 = vpop.permute.xlu0 %2526 }
 0x3ac   :  { %v2579_v18 = vadd.f32 %v2482_v44, %v2355_v34  ;;  %v1727_v12 = vpop.f32.mrf.mxu1 }
 0x3ad   :  { %v1771_v47 = vadd.f32 %v1727_v12, %v4851_v25 }
 0x3ae   :  { %2612 = vst.msk [vmem:[%s5391_s4 + $0x78] sm:$0xff] %vm2596_vm4, %v2579_v18 }
 0x3b1   :  { %v2300_v30 = vpop.f32.mrf.mxu2 }
 0x3b2   :  { %v2356_v55 = vadd.f32 %v2300_v30, %v1763_v62 }
 0x3b4   :  { %v2580_v9 = vadd.f32 %v2487_v45, %v2356_v55  ;;  %v1729_v51 = vpop.f32.mrf.mxu1 }
 0x3b5   :  { %v1772_v37 = vadd.f32 %v1729_v51, %v4864_v57 }
 0x3b6   :  { %2613 = vst.msk [vmem:[%s5391_s4 + $0x80] sm:$0xff] %vm2596_vm4, %v2580_v9  ;;  %v2537_v9 = vpop.permute.xlu2 %2536 }
 0x3b9   :  { %v2302_v42 = vpop.f32.mrf.mxu2 }
 0x3ba   :  { %v2357_v56 = vadd.f32 %v2302_v42, %v1764_v35 }
 0x3bc   :  { %v2581_v54 = vadd.f32 %v2492_v41, %v2357_v56  ;;  %v1732_v14 = vpop.f32.mrf.mxu1  ;;  %v2542_v56 = vpop.permute.xlu0 %2541 }
 0x3bd   :  { %v1773_v25 = vadd.f32 %v1732_v14, %v4878_v3 }
 0x3be   :  { %2614 = vst.msk [vmem:[%s5391_s4 + $0x88] sm:$0xff] %vm2596_vm4, %v2581_v54 }
 0x3c1   :  { %v2305_v10 = vpop.f32.mrf.mxu2 }
 0x3c2   :  { %v2358_v63 = vadd.f32 %v2305_v10, %v1765_v49 }
 0x3c4   :  { %v2582_v38 = vadd.f32 %v2497_v39, %v2358_v63  ;;  %v1734_v30 = vpop.f32.mrf.mxu1  ;;  %v2547_v63 = vpop.permute.xlu1 %2546 }
 0x3c5   :  { %v1774_v35 = vadd.f32 %v1734_v30, %v4891_v23 }
 0x3c6   :  { %2615 = vst.msk [vmem:[%s5391_s4 + $0x90] sm:$0xff] %vm2596_vm4, %v2582_v38 }
 0x3c9   :  { %v2307_v8 = vpop.f32.mrf.mxu2 }
 0x3ca   :  { %v2359_v26 = vadd.f32 %v2307_v8, %v1766_v13 }
 0x3cc   :  { %v2583_v19 = vadd.f32 %v2502_v17, %v2359_v26  ;;  %v1737_v57 = vpop.f32.mrf.mxu1  ;;  %v2552_v26 = vpop.permute.xlu2 %2551 }
 0x3cd   :  { %v1775_v3 = vadd.f32 %v1737_v57, %v4905_v7  ;;  %v2562_v59 = vpop.permute.xlu1 %2561 }
 0x3ce   :  { %2616 = vst.msk [vmem:[%s5391_s4 + $0x98] sm:$0xff] %vm2596_vm4, %v2583_v19 }
 0x3d1   :  { %v2310_v52 = vpop.f32.mrf.mxu2 }
 0x3d2   :  { %v2360_v28 = vadd.f32 %v2310_v52, %v1767_v5  ;;  %v2557_v5 = vpop.permute.xlu0 %2556 }
 0x3d4   :  { %v2584_v46 = vadd.f32 %v2507_v48, %v2360_v28  ;;  %v1739_v49 = vpop.f32.mrf.mxu1 }
 0x3d5   :  { %v1776_v23 = vadd.f32 %v1739_v49, %v4918_v36 }
 0x3d6   :  { %2617 = vst.msk [vmem:[%s5391_s4 + $0xa0] sm:$0xff] %vm2596_vm4, %v2584_v46 }
 0x3d9   :  { %v2312_v6 = vpop.f32.mrf.mxu2 }
 0x3da   :  { %v2361_v32 = vadd.f32 %v2312_v6, %v1768_v33 }
 0x3dc   :  { %v2585_v27 = vadd.f32 %v2512_v20, %v2361_v32  ;;  %v1742_v8 = vpop.f32.mrf.mxu1 }
 0x3dd   :  { %v1777_v7 = vadd.f32 %v1742_v8, %v4932_v50 }
 0x3de   :  { %2618 = vst.msk [vmem:[%s5391_s4 + $0xa8] sm:$0xff] %vm2596_vm4, %v2585_v27 }
 0x3e1   :  { %v2315_v53 = vpop.f32.mrf.mxu2 }
 0x3e2   :  { %v2362_v4 = vadd.f32 %v2315_v53, %v1769_v21 }
 0x3e4   :  { %v2586_v60 = vadd.f32 %v2517_v29, %v2362_v4  ;;  %v1744_v28 = vpop.f32.mrf.mxu1 }
 0x3e5   :  { %v1778_v36 = vadd.f32 %v1744_v28, %v4945_v58 }
 0x3e6   :  { %2619 = vst.msk [vmem:[%s5391_s4 + $0xb0] sm:$0xff] %vm2596_vm4, %v2586_v60 }
 0x3e9   :  { %v2317_v1 = vpop.f32.mrf.mxu2 }
 0x3ea   :  { %v2363_v15 = vadd.f32 %v2317_v1, %v1770_v22 }
 0x3ec   :  { %v2587_v16 = vadd.f32 %v2522_v40, %v2363_v15 }
 0x3ee   :  { %2620 = vst.msk [vmem:[%s5391_s4 + $0xb8] sm:$0xff] %vm2596_vm4, %v2587_v16 }
 0x3f1   :  { %v2320_v2 = vpop.f32.mrf.mxu2 }
 0x3f2   :  { %v2364_v11 = vadd.f32 %v2320_v2, %v1771_v47 }
 0x3f4   :  { %v2588_v44 = vadd.f32 %v2527_v0, %v2364_v11 }
 0x3f6   :  { %2621 = vst.msk [vmem:[%s5391_s4 + $0xc0] sm:$0xff] %vm2596_vm4, %v2588_v44 }
 0x3f9   :  { %v2322_v34 = vpop.f32.mrf.mxu2 }
 0x3fa   :  { %v2365_v18 = vadd.f32 %v2322_v34, %v1772_v37 }
 0x3fc   :  { %v2589_v62 = vadd.f32 %v2532_v43, %v2365_v18 }
 0x3fe   :  { %2622 = vst.msk [vmem:[%s5391_s4 + $0xc8] sm:$0xff] %vm2596_vm4, %v2589_v62 }
 0x401   :  { %v2325_v45 = vpop.f32.mrf.mxu2 }
 0x402   :  { %v2366_v55 = vadd.f32 %v2325_v45, %v1773_v25 }
 0x404   :  { %v2590_v24 = vadd.f32 %v2537_v9, %v2366_v55 }
 0x406   :  { %2623 = vst.msk [vmem:[%s5391_s4 + $0xd0] sm:$0xff] %vm2596_vm4, %v2590_v24 }
 0x409   :  { %v2327_v42 = vpop.f32.mrf.mxu2 }
 0x40a   :  { %v2367_v41 = vadd.f32 %v2327_v42, %v1774_v35 }
 0x40c   :  { %v2591_v54 = vadd.f32 %v2542_v56, %v2367_v41 }
 0x40e   :  { %2624 = vst.msk [vmem:[%s5391_s4 + $0xd8] sm:$0xff] %vm2596_vm4, %v2591_v54 }
 0x411   :  { %v2330_v61 = vpop.f32.mrf.mxu2 }
 0x412   :  { %v2368_v10 = vadd.f32 %v2330_v61, %v1775_v3 }
 0x414   :  { %v2592_v39 = vadd.f32 %v2547_v63, %v2368_v10 }
 0x416   :  { %2625 = vst.msk [vmem:[%s5391_s4 + $0xe0] sm:$0xff] %vm2596_vm4, %v2592_v39 }
 0x419   :  { %v2332_v38 = vpop.f32.mrf.mxu2 }
 0x41a   :  { %v2369_v13 = vadd.f32 %v2332_v38, %v1776_v23 }
 0x41c   :  { %v2593_v31 = vadd.f32 %v2552_v26, %v2369_v13 }
 0x41e   :  { %2626 = vst.msk [vmem:[%s5391_s4 + $0xe8] sm:$0xff] %vm2596_vm4, %v2593_v31 }
 0x421   :  { %v2335_v17 = vpop.f32.mrf.mxu2 }
 0x422   :  { %v2370_v19 = vadd.f32 %v2335_v17, %v1777_v7 }
 0x424   :  { %v2594_v52 = vadd.f32 %v2557_v5, %v2370_v19 }
 0x426   :  { %2627 = vst.msk [vmem:[%s5391_s4 + $0xf0] sm:$0xff] %vm2596_vm4, %v2594_v52 }
 0x429   :  { %v2337_v48 = vpop.f32.mrf.mxu2 }
 0x42a   :  { %v2371_v46 = vadd.f32 %v2337_v48, %v1778_v36 }
 0x42c   :  { %v2595_v33 = vadd.f32 %v2562_v59, %v2371_v46 }
 0x42e   :  { %2629 = vst.msk [vmem:[%s5391_s4 + $0xf8] sm:$0x3] %vm2628_vm5, %v2595_v33 }

</bundles_post_ra>
